<compile_context>
chip_gen: v7x
topology: tpu7x:2x2x1
jax: 0.10.0
libtpu: 0.0.40
codegen_flags: <defaults>
</compile_context>

<pallas_src>
import jax
import jax.numpy as jnp
from jax import lax
from jax.experimental import pallas as pl
from jax.experimental.pallas import tpu as pltpu


# ----------------------------------------------------------------------------
# Fused kernel: one grid step == `bblk` batch elements.
#   q_ref    : (bblk*Lq, D_in)    bf16
#   k_ref    : (bblk*Lk, D_in)    bf16
#   wq_ref   : (D_in, D_out)      bf16  (scale folded in)
#   wkv_ref  : (D_in, 2*D_out)    bf16  (Wk | Wv fused)
#   wp_ref   : (D_out, D_out)     bf16
#   bp/g/b   : (1, D_out)         f32
#   out_ref  : (bblk*Lq, D_out)   f32
#   attn_ref : (bblk, H, Lq, Lk)  f32
# ----------------------------------------------------------------------------
def mha_kernel(q_ref, k_ref, wq_ref, wkv_ref, wp_ref, bp_ref, g_ref, b_ref,
               out_ref, attn_ref):
    bblk, n_heads, lq, lk = attn_ref.shape
    d_out = wq_ref.shape[1]
    hd = d_out // n_heads

    # --- QKV projections: two wide bf16 MXU matmuls over the flattened batch
    #     block (head_dim**-0.5 is pre-folded into Wq at init time).
    q_proj = jnp.dot(q_ref[...], wq_ref[...],
                     preferred_element_type=jnp.float32)        # (bblk*lq, d_out)
    kv_proj = jnp.dot(k_ref[...], wkv_ref[...],
                      preferred_element_type=jnp.float32)       # (bblk*lk, 2*d_out)

    q3 = q_proj.reshape(bblk, lq, d_out)
    k3 = kv_proj[:, :d_out].reshape(bblk, lk, d_out)
    v3 = kv_proj[:, d_out:].reshape(bblk, lk, d_out)

    # --- Per-head attention, batched over the batch block. H is small and
    #     static (loop unrolls); contractions are 3-D leading-batch einsums,
    #     so there is no per-head K transpose and no per-element matmuls.
    ctx_heads = []
    for h in range(n_heads):
        sl = slice(h * hd, (h + 1) * hd)
        qh = q3[:, :, sl].astype(jnp.bfloat16)                  # (bblk, lq, hd)
        kh = k3[:, :, sl].astype(jnp.bfloat16)                  # (bblk, lk, hd)
        vh = v3[:, :, sl].astype(jnp.bfloat16)                  # (bblk, lk, hd)

        s = jnp.einsum("bqd,bkd->bqk", qh, kh,
                       preferred_element_type=jnp.float32)      # (bblk, lq, lk)
        m = jnp.max(s, axis=-1, keepdims=True)
        p = jnp.exp(s - m)
        denom = jnp.sum(p, axis=-1, keepdims=True)
        a = p * pl.reciprocal(denom, approx=True)               # softmax (EUP rcp)

        attn_ref[:, h] = a                                      # contiguous head block
        ctx_heads.append(
            jnp.einsum("bqk,bkd->bqd", a.astype(jnp.bfloat16), vh,
                       preferred_element_type=jnp.float32))     # (bblk, lq, hd)

    ctx = jnp.concatenate(ctx_heads, axis=-1).reshape(bblk * lq, d_out)

    # --- Output projection + LayerNorm (biased variance, eps=1e-5: PyTorch).
    y = jnp.dot(ctx.astype(jnp.bfloat16), wp_ref[...],
                preferred_element_type=jnp.float32) + bp_ref[...]
    mu = jnp.mean(y, axis=-1, keepdims=True)
    var = jnp.mean(jnp.square(y - mu), axis=-1, keepdims=True)
    y = (y - mu) * lax.rsqrt(var + 1e-5)
    out_ref[...] = y * g_ref[...] + b_ref[...]


def _pick_batch_block(batch, max_block=8):
    """Largest block (<= max_block) dividing `batch` that still leaves >= 2 grid
    steps (so both v7x TensorCores get work); else take the whole batch."""
    best = 0
    for cand in range(1, min(batch, max_block) + 1):
        if batch % cand == 0 and batch // cand >= 2:
            best = cand
    if best == 0:
        best = batch if batch <= max_block else 1
    return best


def _make_in_specs(bblk, lq, lk, d_in, d_out, single_buffer_consts):
    # Weight/bias/LN blocks never change across the grid -> single-buffer them
    # (halves their VMEM footprint) when the jax build supports pl.Buffered(1).
    const = {"pipeline_mode": pl.Buffered(1)} if single_buffer_consts else {}
    return [
        pl.BlockSpec((bblk * lq, d_in), lambda b: (b, 0)),          # query rows
        pl.BlockSpec((bblk * lk, d_in), lambda b: (b, 0)),          # key rows
        pl.BlockSpec((d_in, d_out), lambda b: (0, 0), **const),     # Wq^T * scale
        pl.BlockSpec((d_in, 2 * d_out), lambda b: (0, 0), **const), # [Wk^T | Wv^T]
        pl.BlockSpec((d_out, d_out), lambda b: (0, 0), **const),    # Wp^T
        pl.BlockSpec((1, d_out), lambda b: (0, 0), **const),        # proj bias
        pl.BlockSpec((1, d_out), lambda b: (0, 0), **const),        # LN gamma
        pl.BlockSpec((1, d_out), lambda b: (0, 0), **const),        # LN beta
    ]


def multi_head_attention(params, query, key):
    B, lq, d_in = query.shape
    lk = key.shape[1]
    d_out = params["wp_t"].shape[1]
    n_heads = int(params["heads"])
    bblk = _pick_batch_block(B)
    grid = (B // bblk,)

    # Flatten (B, L, D) -> (B*L, D) host-side (free) so the kernel sees 2-D
    # lane-dense operands; cast MXU inputs to bf16 (halves HBM/VMEM traffic).
    q2d = query.reshape(B * lq, d_in).astype(jnp.bfloat16)
    k2d = key.reshape(B * lk, d_in).astype(jnp.bfloat16)

    out_shape = (
        jax.ShapeDtypeStruct((B * lq, d_out), jnp.float32),
        jax.ShapeDtypeStruct((B, n_heads, lq, lk), jnp.float32),
    )
    out_specs = (
        pl.BlockSpec((bblk * lq, d_out), lambda b: (b, 0)),
        pl.BlockSpec((bblk, n_heads, lq, lk), lambda b: (b, 0, 0, 0)),
    )
    args = (q2d, k2d, params["wq_kern"], params["wkv_kern"], params["wp_kern"],
            params["bp"], params["gamma"], params["beta"])

    def run(single_buffer_consts):
        return pl.pallas_call(
            mha_kernel,
            out_shape=out_shape,
            grid=grid,
            in_specs=_make_in_specs(bblk, lq, lk, d_in, d_out,
                                    single_buffer_consts),
            out_specs=out_specs,
            compiler_params=pltpu.CompilerParams(
                dimension_semantics=("parallel",),
                vmem_limit_bytes=32 * 1024 * 1024,
            ),
        )(*args)

    try:
        out2d, attn = run(True)
    except Exception:
        # pl.Buffered(1) not supported on this jax build: default double-buffer.
        out2d, attn = run(False)
    return out2d.reshape(B, lq, d_out), attn


# ----------------------------------------------------------------------------
# Parameter init matching the PyTorch module's reset_parameters().
# ----------------------------------------------------------------------------
def init_params(key, in_dim, out_dim, n_heads):
    assert out_dim % n_heads == 0
    k1, k2, k3, k4, k5 = jax.random.split(key, 5)
    u = lambda k, shape: jax.random.uniform(k, shape, jnp.float32, -0.1, 0.1)
    wq = u(k1, (out_dim, in_dim))            # torch layout (out, in)
    wk = u(k2, (out_dim, in_dim))
    wv = u(k3, (out_dim, in_dim))
    wp = u(k4, (out_dim, out_dim))
    bound = 1.0 / float(out_dim) ** 0.5      # default nn.Linear bias init
    bp = jax.random.uniform(k5, (out_dim,), jnp.float32, -bound, bound)
    scale = float(out_dim // n_heads) ** (-0.5)
    return {
        "heads": n_heads,
        # f32 torch-transposed weights for the pure-JAX reference.
        "wq_t": wq.T, "wk_t": wk.T, "wv_t": wv.T, "wp_t": wp.T,
        "bp": bp.reshape(1, out_dim),
        "gamma": jnp.ones((1, out_dim), jnp.float32),
        "beta": jnp.zeros((1, out_dim), jnp.float32),
        # Kernel-side weights: bf16, scale folded into Wq, Wk|Wv fused.
        "wq_kern": (wq.T * scale).astype(jnp.bfloat16),
        "wkv_kern": jnp.concatenate([wk.T, wv.T], axis=1).astype(jnp.bfloat16),
        "wp_kern": wp.T.astype(jnp.bfloat16),
    }


# ----------------------------------------------------------------------------
# Pure-JAX f32 reference (mirrors the PyTorch forward, None-mask path).
# ----------------------------------------------------------------------------
def mha_reference(params, query, key):
    B, lq, _ = query.shape
    lk = key.shape[1]
    n_heads = int(params["heads"])
    d_out = params["wq_t"].shape[1]
    hd = d_out // n_heads

    Q = query @ params["wq_t"]
    K = key @ params["wk_t"]
    V = key @ params["wv_t"]
    Qh = Q.reshape(B, lq, n_heads, hd).transpose(0, 2, 1, 3)
    Kh = K.reshape(B, lk, n_heads, hd).transpose(0, 2, 1, 3)
    Vh = V.reshape(B, lk, n_heads, hd).transpose(0, 2, 1, 3)

    scores = jnp.einsum("bhqd,bhkd->bhqk", Qh, Kh) * (float(hd) ** -0.5)
    attn = jax.nn.softmax(scores, axis=-1)
    ctx = jnp.einsum("bhqk,bhkd->bhqd", attn, Vh)
    ctx = ctx.transpose(0, 2, 1, 3).reshape(B, lq, d_out)

    y = ctx @ params["wp_t"] + params["bp"]
    mu = y.mean(-1, keepdims=True)
    var = ((y - mu) ** 2).mean(-1, keepdims=True)
    y = (y - mu) / jnp.sqrt(var + 1e-5)
    y = y * params["gamma"] + params["beta"]
    return y, attn


if __name__ == "__main__":
    root = jax.random.PRNGKey(0)
    kp, kq, kk = jax.random.split(root, 3)

    B, Lq, Lk = 4, 8, 16
    IN_DIM, OUT_DIM, HEADS = 32, 64, 4

    params = init_params(kp, IN_DIM, OUT_DIM, HEADS)
    query = jax.random.normal(kq, (B, Lq, IN_DIM), jnp.float32)
    key_in = jax.random.normal(kk, (B, Lk, IN_DIM), jnp.float32)

    out, attn = multi_head_attention(params, query, key_in)
    out = jax.block_until_ready(out)
    attn = jax.block_until_ready(attn)

    assert out.shape == (B, Lq, OUT_DIM), out.shape
    assert attn.shape == (B, HEADS, Lq, Lk), attn.shape

    out_ref, attn_ref = mha_reference(params, query, key_in)
    # bf16 MXU operands + EUP approx reciprocal introduce small deviations that
    # get amplified ~1/std by LayerNorm, so the output tolerance is ~2e-2 vs.
    # the strictly-f32 reference; attention probabilities stay within 5e-3.
    assert jnp.allclose(out, out_ref, atol=2.5e-2, rtol=2e-2), \
        float(jnp.max(jnp.abs(out - out_ref)))
    assert jnp.allclose(attn, attn_ref, atol=5e-3, rtol=5e-3), \
        float(jnp.max(jnp.abs(attn - attn_ref)))

    print("KERNEL_OK")
</pallas_src>

<mosaic_0001>
module attributes {stable_mosaic.version = 11 : i64} {
  func.func @mha_kernel(%arg0: i32, %arg1: memref<16x32xbf16, #tpu.memory_space<vmem>>, %arg2: memref<32x32xbf16, #tpu.memory_space<vmem>>, %arg3: memref<32x64xbf16, #tpu.memory_space<vmem>>, %arg4: memref<32x128xbf16, #tpu.memory_space<vmem>>, %arg5: memref<64x64xbf16, #tpu.memory_space<vmem>>, %arg6: memref<1x64xf32, #tpu.memory_space<vmem>>, %arg7: memref<1x64xf32, #tpu.memory_space<vmem>>, %arg8: memref<1x64xf32, #tpu.memory_space<vmem>>, %arg9: memref<16x64xf32, #tpu.memory_space<vmem>>, %arg10: memref<2x4x8x16xf32, #tpu.memory_space<vmem>>) attributes {dimension_semantics = [#tpu.dimension_semantics<parallel>], iteration_bounds = array<i64: 2>, scalar_prefetch = 0 : i64, scratch_operands = 0 : i64, tpu.core_type = #tpu.core_type<tc>, window_params = [{transform_indices = @transform_0, window_bounds = array<i64: 16, 32>}, {transform_indices = @transform_1, window_bounds = array<i64: 32, 32>}, {pipeline_mode = #tpu.pipeline_mode<synchronous>, transform_indices = @transform_2, window_bounds = array<i64: 32, 64>}, {pipeline_mode = #tpu.pipeline_mode<synchronous>, transform_indices = @transform_3, window_bounds = array<i64: 32, 128>}, {pipeline_mode = #tpu.pipeline_mode<synchronous>, transform_indices = @transform_4, window_bounds = array<i64: 64, 64>}, {pipeline_mode = #tpu.pipeline_mode<synchronous>, transform_indices = @transform_5, window_bounds = array<i64: 1, 64>}, {pipeline_mode = #tpu.pipeline_mode<synchronous>, transform_indices = @transform_6, window_bounds = array<i64: 1, 64>}, {pipeline_mode = #tpu.pipeline_mode<synchronous>, transform_indices = @transform_7, window_bounds = array<i64: 1, 64>}, {transform_indices = @transform_8, window_bounds = array<i64: 16, 64>}, {transform_indices = @transform_9, window_bounds = array<i64: 2, 4, 8, 16>}]} {
    %c0 = arith.constant 0 : index
    %c0_0 = arith.constant 0 : index
    %0 = vector.load %arg1[%c0, %c0_0] : memref<16x32xbf16, #tpu.memory_space<vmem>>, vector<16x32xbf16>
    %c0_1 = arith.constant 0 : index
    %c0_2 = arith.constant 0 : index
    %1 = vector.load %arg3[%c0_1, %c0_2] : memref<32x64xbf16, #tpu.memory_space<vmem>>, vector<32x64xbf16>
    %cst = arith.constant dense<0.000000e+00> : vector<16x64xf32>
    %2 = tpu.matmul %0, %1, %cst {dimension_numbers = #tpu.dot_dimension_numbers<[1], [0], [0], [1], [0, 0, 1, 1], [], []>} : vector<16x32xbf16>, vector<32x64xbf16>, vector<16x64xf32> -> vector<16x64xf32>
    %c0_3 = arith.constant 0 : index
    %c0_4 = arith.constant 0 : index
    %3 = vector.load %arg2[%c0_3, %c0_4] : memref<32x32xbf16, #tpu.memory_space<vmem>>, vector<32x32xbf16>
    %c0_5 = arith.constant 0 : index
    %c0_6 = arith.constant 0 : index
    %4 = vector.load %arg4[%c0_5, %c0_6] : memref<32x128xbf16, #tpu.memory_space<vmem>>, vector<32x128xbf16>
    %cst_7 = arith.constant dense<0.000000e+00> : vector<32x128xf32>
    %5 = tpu.matmul %3, %4, %cst_7 {dimension_numbers = #tpu.dot_dimension_numbers<[1], [0], [0], [1], [0, 0, 1, 1], [], []>} : vector<32x32xbf16>, vector<32x128xbf16>, vector<32x128xf32> -> vector<32x128xf32>
    %6 = vector.shape_cast %2 : vector<16x64xf32> to vector<2x8x64xf32>
    %7 = vector.extract_strided_slice %5 {offsets = [0, 0], sizes = [32, 64], strides = [1, 1]} : vector<32x128xf32> to vector<32x64xf32>
    %8 = vector.shape_cast %7 : vector<32x64xf32> to vector<2x16x64xf32>
    %9 = vector.extract_strided_slice %5 {offsets = [0, 64], sizes = [32, 64], strides = [1, 1]} : vector<32x128xf32> to vector<32x64xf32>
    %10 = vector.shape_cast %9 : vector<32x64xf32> to vector<2x16x64xf32>
    %11 = vector.extract_strided_slice %6 {offsets = [0, 0, 0], sizes = [2, 8, 16], strides = [1, 1, 1]} : vector<2x8x64xf32> to vector<2x8x16xf32>
    %12 = arith.truncf %11 : vector<2x8x16xf32> to vector<2x8x16xbf16>
    %13 = vector.extract_strided_slice %8 {offsets = [0, 0, 0], sizes = [2, 16, 16], strides = [1, 1, 1]} : vector<2x16x64xf32> to vector<2x16x16xf32>
    %14 = arith.truncf %13 : vector<2x16x16xf32> to vector<2x16x16xbf16>
    %15 = vector.extract_strided_slice %10 {offsets = [0, 0, 0], sizes = [2, 16, 16], strides = [1, 1, 1]} : vector<2x16x64xf32> to vector<2x16x16xf32>
    %16 = arith.truncf %15 : vector<2x16x16xf32> to vector<2x16x16xbf16>
    "tpu.trace_start"() <{level = 10 : i32, message = "bqd,bkd->bqk"}> : () -> ()
    %cst_8 = arith.constant dense<0.000000e+00> : vector<2x8x16xf32>
    %17 = tpu.matmul %12, %14, %cst_8 {dimension_numbers = #tpu.dot_dimension_numbers<[2], [2], [1], [1], [0, 0, 0, 1, 1, 1], [0], [0]>} : vector<2x8x16xbf16>, vector<2x16x16xbf16>, vector<2x8x16xf32> -> vector<2x8x16xf32>
    "tpu.trace_stop"() : () -> ()
    %cst_9 = arith.constant dense<0xFF800000> : vector<2x8xf32>
    %18 = vector.multi_reduction <maximumf>, %17, %cst_9 [2] : vector<2x8x16xf32> to vector<2x8xf32>
    %19 = vector.shape_cast %18 : vector<2x8xf32> to vector<2x8x1xf32>
    %20 = vector.broadcast %19 : vector<2x8x1xf32> to vector<2x8x16xf32>
    %21 = arith.subf %17, %20 : vector<2x8x16xf32>
    %22 = math.exp %21 : vector<2x8x16xf32>
    %cst_10 = arith.constant dense<0.000000e+00> : vector<2x8xf32>
    %23 = vector.multi_reduction <add>, %22, %cst_10 [2] : vector<2x8x16xf32> to vector<2x8xf32>
    %24 = vector.shape_cast %23 : vector<2x8xf32> to vector<2x8x1xf32>
    %25 = tpu.reciprocal %24 {approx = true} : vector<2x8x1xf32> -> vector<2x8x1xf32>
    %26 = vector.broadcast %25 : vector<2x8x1xf32> to vector<2x8x16xf32>
    %27 = arith.mulf %22, %26 : vector<2x8x16xf32>
    %c0_11 = arith.constant 0 : index
    %c0_12 = arith.constant 0 : index
    %c0_13 = arith.constant 0 : index
    %c0_14 = arith.constant 0 : index
    %28 = vector.load %arg10[%c0_11, %c0_12, %c0_13, %c0_14] : memref<2x4x8x16xf32, #tpu.memory_space<vmem>>, vector<2x1x8x16xf32>
    %29 = vector.shape_cast %28 : vector<2x1x8x16xf32> to vector<2x8x16xf32>
    %30 = vector.shape_cast %27 : vector<2x8x16xf32> to vector<2x1x8x16xf32>
    tpu.vector_store %arg10[%c0_11, %c0_12, %c0_13, %c0_14], %30 {strides = array<i32>} : memref<2x4x8x16xf32, #tpu.memory_space<vmem>>, vector<2x1x8x16xf32>,
    %31 = arith.truncf %27 : vector<2x8x16xf32> to vector<2x8x16xbf16>
    "tpu.trace_start"() <{level = 10 : i32, message = "bqk,bkd->bqd"}> : () -> ()
    %cst_15 = arith.constant dense<0.000000e+00> : vector<2x8x16xf32>
    %32 = tpu.matmul %31, %16, %cst_15 {dimension_numbers = #tpu.dot_dimension_numbers<[2], [1], [1], [2], [0, 0, 0, 1, 1, 2], [0], [0]>} : vector<2x8x16xbf16>, vector<2x16x16xbf16>, vector<2x8x16xf32> -> vector<2x8x16xf32>
    "tpu.trace_stop"() : () -> ()
    %33 = vector.extract_strided_slice %6 {offsets = [0, 0, 16], sizes = [2, 8, 16], strides = [1, 1, 1]} : vector<2x8x64xf32> to vector<2x8x16xf32>
    %34 = arith.truncf %33 : vector<2x8x16xf32> to vector<2x8x16xbf16>
    %35 = vector.extract_strided_slice %8 {offsets = [0, 0, 16], sizes = [2, 16, 16], strides = [1, 1, 1]} : vector<2x16x64xf32> to vector<2x16x16xf32>
    %36 = arith.truncf %35 : vector<2x16x16xf32> to vector<2x16x16xbf16>
    %37 = vector.extract_strided_slice %10 {offsets = [0, 0, 16], sizes = [2, 16, 16], strides = [1, 1, 1]} : vector<2x16x64xf32> to vector<2x16x16xf32>
    %38 = arith.truncf %37 : vector<2x16x16xf32> to vector<2x16x16xbf16>
    "tpu.trace_start"() <{level = 10 : i32, message = "bqd,bkd->bqk"}> : () -> ()
    %cst_16 = arith.constant dense<0.000000e+00> : vector<2x8x16xf32>
    %39 = tpu.matmul %34, %36, %cst_16 {dimension_numbers = #tpu.dot_dimension_numbers<[2], [2], [1], [1], [0, 0, 0, 1, 1, 1], [0], [0]>} : vector<2x8x16xbf16>, vector<2x16x16xbf16>, vector<2x8x16xf32> -> vector<2x8x16xf32>
    "tpu.trace_stop"() : () -> ()
    %cst_17 = arith.constant dense<0xFF800000> : vector<2x8xf32>
    %40 = vector.multi_reduction <maximumf>, %39, %cst_17 [2] : vector<2x8x16xf32> to vector<2x8xf32>
    %41 = vector.shape_cast %40 : vector<2x8xf32> to vector<2x8x1xf32>
    %42 = vector.broadcast %41 : vector<2x8x1xf32> to vector<2x8x16xf32>
    %43 = arith.subf %39, %42 : vector<2x8x16xf32>
    %44 = math.exp %43 : vector<2x8x16xf32>
    %cst_18 = arith.constant dense<0.000000e+00> : vector<2x8xf32>
    %45 = vector.multi_reduction <add>, %44, %cst_18 [2] : vector<2x8x16xf32> to vector<2x8xf32>
    %46 = vector.shape_cast %45 : vector<2x8xf32> to vector<2x8x1xf32>
    %47 = tpu.reciprocal %46 {approx = true} : vector<2x8x1xf32> -> vector<2x8x1xf32>
    %48 = vector.broadcast %47 : vector<2x8x1xf32> to vector<2x8x16xf32>
    %49 = arith.mulf %44, %48 : vector<2x8x16xf32>
    %c0_19 = arith.constant 0 : index
    %c1 = arith.constant 1 : index
    %c0_20 = arith.constant 0 : index
    %c0_21 = arith.constant 0 : index
    %50 = vector.load %arg10[%c0_19, %c1, %c0_20, %c0_21] : memref<2x4x8x16xf32, #tpu.memory_space<vmem>>, vector<2x1x8x16xf32>
    %51 = vector.shape_cast %50 : vector<2x1x8x16xf32> to vector<2x8x16xf32>
    %52 = vector.shape_cast %49 : vector<2x8x16xf32> to vector<2x1x8x16xf32>
    tpu.vector_store %arg10[%c0_19, %c1, %c0_20, %c0_21], %52 {strides = array<i32>} : memref<2x4x8x16xf32, #tpu.memory_space<vmem>>, vector<2x1x8x16xf32>,
    %53 = arith.truncf %49 : vector<2x8x16xf32> to vector<2x8x16xbf16>
    "tpu.trace_start"() <{level = 10 : i32, message = "bqk,bkd->bqd"}> : () -> ()
    %cst_22 = arith.constant dense<0.000000e+00> : vector<2x8x16xf32>
    %54 = tpu.matmul %53, %38, %cst_22 {dimension_numbers = #tpu.dot_dimension_numbers<[2], [1], [1], [2], [0, 0, 0, 1, 1, 2], [0], [0]>} : vector<2x8x16xbf16>, vector<2x16x16xbf16>, vector<2x8x16xf32> -> vector<2x8x16xf32>
    "tpu.trace_stop"() : () -> ()
    %55 = vector.extract_strided_slice %6 {offsets = [0, 0, 32], sizes = [2, 8, 16], strides = [1, 1, 1]} : vector<2x8x64xf32> to vector<2x8x16xf32>
    %56 = arith.truncf %55 : vector<2x8x16xf32> to vector<2x8x16xbf16>
    %57 = vector.extract_strided_slice %8 {offsets = [0, 0, 32], sizes = [2, 16, 16], strides = [1, 1, 1]} : vector<2x16x64xf32> to vector<2x16x16xf32>
    %58 = arith.truncf %57 : vector<2x16x16xf32> to vector<2x16x16xbf16>
    %59 = vector.extract_strided_slice %10 {offsets = [0, 0, 32], sizes = [2, 16, 16], strides = [1, 1, 1]} : vector<2x16x64xf32> to vector<2x16x16xf32>
    %60 = arith.truncf %59 : vector<2x16x16xf32> to vector<2x16x16xbf16>
    "tpu.trace_start"() <{level = 10 : i32, message = "bqd,bkd->bqk"}> : () -> ()
    %cst_23 = arith.constant dense<0.000000e+00> : vector<2x8x16xf32>
    %61 = tpu.matmul %56, %58, %cst_23 {dimension_numbers = #tpu.dot_dimension_numbers<[2], [2], [1], [1], [0, 0, 0, 1, 1, 1], [0], [0]>} : vector<2x8x16xbf16>, vector<2x16x16xbf16>, vector<2x8x16xf32> -> vector<2x8x16xf32>
    "tpu.trace_stop"() : () -> ()
    %cst_24 = arith.constant dense<0xFF800000> : vector<2x8xf32>
    %62 = vector.multi_reduction <maximumf>, %61, %cst_24 [2] : vector<2x8x16xf32> to vector<2x8xf32>
    %63 = vector.shape_cast %62 : vector<2x8xf32> to vector<2x8x1xf32>
    %64 = vector.broadcast %63 : vector<2x8x1xf32> to vector<2x8x16xf32>
    %65 = arith.subf %61, %64 : vector<2x8x16xf32>
    %66 = math.exp %65 : vector<2x8x16xf32>
    %cst_25 = arith.constant dense<0.000000e+00> : vector<2x8xf32>
    %67 = vector.multi_reduction <add>, %66, %cst_25 [2] : vector<2x8x16xf32> to vector<2x8xf32>
    %68 = vector.shape_cast %67 : vector<2x8xf32> to vector<2x8x1xf32>
    %69 = tpu.reciprocal %68 {approx = true} : vector<2x8x1xf32> -> vector<2x8x1xf32>
    %70 = vector.broadcast %69 : vector<2x8x1xf32> to vector<2x8x16xf32>
    %71 = arith.mulf %66, %70 : vector<2x8x16xf32>
    %c0_26 = arith.constant 0 : index
    %c2 = arith.constant 2 : index
    %c0_27 = arith.constant 0 : index
    %c0_28 = arith.constant 0 : index
    %72 = vector.load %arg10[%c0_26, %c2, %c0_27, %c0_28] : memref<2x4x8x16xf32, #tpu.memory_space<vmem>>, vector<2x1x8x16xf32>
    %73 = vector.shape_cast %72 : vector<2x1x8x16xf32> to vector<2x8x16xf32>
    %74 = vector.shape_cast %71 : vector<2x8x16xf32> to vector<2x1x8x16xf32>
    tpu.vector_store %arg10[%c0_26, %c2, %c0_27, %c0_28], %74 {strides = array<i32>} : memref<2x4x8x16xf32, #tpu.memory_space<vmem>>, vector<2x1x8x16xf32>,
    %75 = arith.truncf %71 : vector<2x8x16xf32> to vector<2x8x16xbf16>
    "tpu.trace_start"() <{level = 10 : i32, message = "bqk,bkd->bqd"}> : () -> ()
    %cst_29 = arith.constant dense<0.000000e+00> : vector<2x8x16xf32>
    %76 = tpu.matmul %75, %60, %cst_29 {dimension_numbers = #tpu.dot_dimension_numbers<[2], [1], [1], [2], [0, 0, 0, 1, 1, 2], [0], [0]>} : vector<2x8x16xbf16>, vector<2x16x16xbf16>, vector<2x8x16xf32> -> vector<2x8x16xf32>
    "tpu.trace_stop"() : () -> ()
    %77 = vector.extract_strided_slice %6 {offsets = [0, 0, 48], sizes = [2, 8, 16], strides = [1, 1, 1]} : vector<2x8x64xf32> to vector<2x8x16xf32>
    %78 = arith.truncf %77 : vector<2x8x16xf32> to vector<2x8x16xbf16>
    %79 = vector.extract_strided_slice %8 {offsets = [0, 0, 48], sizes = [2, 16, 16], strides = [1, 1, 1]} : vector<2x16x64xf32> to vector<2x16x16xf32>
    %80 = arith.truncf %79 : vector<2x16x16xf32> to vector<2x16x16xbf16>
    %81 = vector.extract_strided_slice %10 {offsets = [0, 0, 48], sizes = [2, 16, 16], strides = [1, 1, 1]} : vector<2x16x64xf32> to vector<2x16x16xf32>
    %82 = arith.truncf %81 : vector<2x16x16xf32> to vector<2x16x16xbf16>
    "tpu.trace_start"() <{level = 10 : i32, message = "bqd,bkd->bqk"}> : () -> ()
    %cst_30 = arith.constant dense<0.000000e+00> : vector<2x8x16xf32>
    %83 = tpu.matmul %78, %80, %cst_30 {dimension_numbers = #tpu.dot_dimension_numbers<[2], [2], [1], [1], [0, 0, 0, 1, 1, 1], [0], [0]>} : vector<2x8x16xbf16>, vector<2x16x16xbf16>, vector<2x8x16xf32> -> vector<2x8x16xf32>
    "tpu.trace_stop"() : () -> ()
    %cst_31 = arith.constant dense<0xFF800000> : vector<2x8xf32>
    %84 = vector.multi_reduction <maximumf>, %83, %cst_31 [2] : vector<2x8x16xf32> to vector<2x8xf32>
    %85 = vector.shape_cast %84 : vector<2x8xf32> to vector<2x8x1xf32>
    %86 = vector.broadcast %85 : vector<2x8x1xf32> to vector<2x8x16xf32>
    %87 = arith.subf %83, %86 : vector<2x8x16xf32>
    %88 = math.exp %87 : vector<2x8x16xf32>
    %cst_32 = arith.constant dense<0.000000e+00> : vector<2x8xf32>
    %89 = vector.multi_reduction <add>, %88, %cst_32 [2] : vector<2x8x16xf32> to vector<2x8xf32>
    %90 = vector.shape_cast %89 : vector<2x8xf32> to vector<2x8x1xf32>
    %91 = tpu.reciprocal %90 {approx = true} : vector<2x8x1xf32> -> vector<2x8x1xf32>
    %92 = vector.broadcast %91 : vector<2x8x1xf32> to vector<2x8x16xf32>
    %93 = arith.mulf %88, %92 : vector<2x8x16xf32>
    %c0_33 = arith.constant 0 : index
    %c3 = arith.constant 3 : index
    %c0_34 = arith.constant 0 : index
    %c0_35 = arith.constant 0 : index
    %94 = vector.load %arg10[%c0_33, %c3, %c0_34, %c0_35] : memref<2x4x8x16xf32, #tpu.memory_space<vmem>>, vector<2x1x8x16xf32>
    %95 = vector.shape_cast %94 : vector<2x1x8x16xf32> to vector<2x8x16xf32>
    %96 = vector.shape_cast %93 : vector<2x8x16xf32> to vector<2x1x8x16xf32>
    tpu.vector_store %arg10[%c0_33, %c3, %c0_34, %c0_35], %96 {strides = array<i32>} : memref<2x4x8x16xf32, #tpu.memory_space<vmem>>, vector<2x1x8x16xf32>,
    %97 = arith.truncf %93 : vector<2x8x16xf32> to vector<2x8x16xbf16>
    "tpu.trace_start"() <{level = 10 : i32, message = "bqk,bkd->bqd"}> : () -> ()
    %cst_36 = arith.constant dense<0.000000e+00> : vector<2x8x16xf32>
    %98 = tpu.matmul %97, %82, %cst_36 {dimension_numbers = #tpu.dot_dimension_numbers<[2], [1], [1], [2], [0, 0, 0, 1, 1, 2], [0], [0]>} : vector<2x8x16xbf16>, vector<2x16x16xbf16>, vector<2x8x16xf32> -> vector<2x8x16xf32>
    "tpu.trace_stop"() : () -> ()
    %99 = tpu.concatenate %32, %54, %76, %98 in 2 : vector<2x8x16xf32>, vector<2x8x16xf32>, vector<2x8x16xf32>, vector<2x8x16xf32> -> vector<2x8x64xf32>
    %100 = vector.shape_cast %99 : vector<2x8x64xf32> to vector<16x64xf32>
    %101 = arith.truncf %100 : vector<16x64xf32> to vector<16x64xbf16>
    %c0_37 = arith.constant 0 : index
    %c0_38 = arith.constant 0 : index
    %102 = vector.load %arg5[%c0_37, %c0_38] : memref<64x64xbf16, #tpu.memory_space<vmem>>, vector<64x64xbf16>
    %cst_39 = arith.constant dense<0.000000e+00> : vector<16x64xf32>
    %103 = tpu.matmul %101, %102, %cst_39 {dimension_numbers = #tpu.dot_dimension_numbers<[1], [0], [0], [1], [0, 0, 1, 1], [], []>} : vector<16x64xbf16>, vector<64x64xbf16>, vector<16x64xf32> -> vector<16x64xf32>
    %c0_40 = arith.constant 0 : index
    %c0_41 = arith.constant 0 : index
    %104 = vector.load %arg6[%c0_40, %c0_41] : memref<1x64xf32, #tpu.memory_space<vmem>>, vector<1x64xf32>
    %105 = vector.broadcast %104 : vector<1x64xf32> to vector<16x64xf32>
    %106 = arith.addf %103, %105 : vector<16x64xf32>
    %cst_42 = arith.constant dense<0.000000e+00> : vector<16xf32>
    %107 = vector.multi_reduction <add>, %106, %cst_42 [1] : vector<16x64xf32> to vector<16xf32>
    %108 = vector.shape_cast %107 : vector<16xf32> to vector<16x1xf32>
    %cst_43 = arith.constant 6.400000e+01 : f32
    %109 = vector.broadcast %cst_43 : f32 to vector<16x1xf32>
    %110 = arith.divf %108, %109 : vector<16x1xf32>
    %111 = vector.broadcast %110 : vector<16x1xf32> to vector<16x64xf32>
    %112 = arith.subf %106, %111 : vector<16x64xf32>
    %113 = arith.mulf %112, %112 : vector<16x64xf32>
    %cst_44 = arith.constant dense<0.000000e+00> : vector<16xf32>
    %114 = vector.multi_reduction <add>, %113, %cst_44 [1] : vector<16x64xf32> to vector<16xf32>
    %115 = vector.shape_cast %114 : vector<16xf32> to vector<16x1xf32>
    %cst_45 = arith.constant 6.400000e+01 : f32
    %116 = vector.broadcast %cst_45 : f32 to vector<16x1xf32>
    %117 = arith.divf %115, %116 : vector<16x1xf32>
    %118 = vector.broadcast %110 : vector<16x1xf32> to vector<16x64xf32>
    %119 = arith.subf %106, %118 : vector<16x64xf32>
    %cst_46 = arith.constant 9.99999974E-6 : f32
    %120 = vector.broadcast %cst_46 : f32 to vector<16x1xf32>
    %121 = arith.addf %117, %120 : vector<16x1xf32>
    %122 = math.rsqrt %121 : vector<16x1xf32>
    %123 = vector.broadcast %122 : vector<16x1xf32> to vector<16x64xf32>
    %124 = arith.mulf %119, %123 : vector<16x64xf32>
    %c0_47 = arith.constant 0 : index
    %c0_48 = arith.constant 0 : index
    %125 = vector.load %arg7[%c0_47, %c0_48] : memref<1x64xf32, #tpu.memory_space<vmem>>, vector<1x64xf32>
    %126 = vector.broadcast %125 : vector<1x64xf32> to vector<16x64xf32>
    %127 = arith.mulf %124, %126 : vector<16x64xf32>
    %c0_49 = arith.constant 0 : index
    %c0_50 = arith.constant 0 : index
    %128 = vector.load %arg8[%c0_49, %c0_50] : memref<1x64xf32, #tpu.memory_space<vmem>>, vector<1x64xf32>
    %129 = vector.broadcast %128 : vector<1x64xf32> to vector<16x64xf32>
    %130 = arith.addf %127, %129 : vector<16x64xf32>
    %c0_51 = arith.constant 0 : index
    %c0_52 = arith.constant 0 : index
    %131 = vector.load %arg9[%c0_51, %c0_52] : memref<16x64xf32, #tpu.memory_space<vmem>>, vector<16x64xf32>
    tpu.vector_store %arg9[%c0_51, %c0_52], %130 {strides = array<i32>} : memref<16x64xf32, #tpu.memory_space<vmem>>, vector<16x64xf32>,
    return
  }
  func.func @transform_0(%arg0: i32) -> (i32, i32) {
    %c0_i32 = arith.constant 0 : i32
    %c0_i32_0 = arith.constant 0 : i32
    return %arg0, %c0_i32 : i32, i32
  }
  func.func @transform_1(%arg0: i32) -> (i32, i32) {
    %c0_i32 = arith.constant 0 : i32
    %c0_i32_0 = arith.constant 0 : i32
    return %arg0, %c0_i32 : i32, i32
  }
  func.func @transform_2(%arg0: i32) -> (i32, i32) {
    %c0_i32 = arith.constant 0 : i32
    %c0_i32_0 = arith.constant 0 : i32
    %c0_i32_1 = arith.constant 0 : i32
    return %c0_i32, %c0_i32_0 : i32, i32
  }
  func.func @transform_3(%arg0: i32) -> (i32, i32) {
    %c0_i32 = arith.constant 0 : i32
    %c0_i32_0 = arith.constant 0 : i32
    %c0_i32_1 = arith.constant 0 : i32
    return %c0_i32, %c0_i32_0 : i32, i32
  }
  func.func @transform_4(%arg0: i32) -> (i32, i32) {
    %c0_i32 = arith.constant 0 : i32
    %c0_i32_0 = arith.constant 0 : i32
    %c0_i32_1 = arith.constant 0 : i32
    return %c0_i32, %c0_i32_0 : i32, i32
  }
  func.func @transform_5(%arg0: i32) -> (i32, i32) {
    %c0_i32 = arith.constant 0 : i32
    %c0_i32_0 = arith.constant 0 : i32
    %c0_i32_1 = arith.constant 0 : i32
    return %c0_i32, %c0_i32_0 : i32, i32
  }
  func.func @transform_6(%arg0: i32) -> (i32, i32) {
    %c0_i32 = arith.constant 0 : i32
    %c0_i32_0 = arith.constant 0 : i32
    %c0_i32_1 = arith.constant 0 : i32
    return %c0_i32, %c0_i32_0 : i32, i32
  }
  func.func @transform_7(%arg0: i32) -> (i32, i32) {
    %c0_i32 = arith.constant 0 : i32
    %c0_i32_0 = arith.constant 0 : i32
    %c0_i32_1 = arith.constant 0 : i32
    return %c0_i32, %c0_i32_0 : i32, i32
  }
  func.func @transform_8(%arg0: i32) -> (i32, i32) {
    %c0_i32 = arith.constant 0 : i32
    %c0_i32_0 = arith.constant 0 : i32
    return %arg0, %c0_i32 : i32, i32
  }
  func.func @transform_9(%arg0: i32) -> (i32, i32, i32, i32) {
    %c0_i32 = arith.constant 0 : i32
    %c0_i32_0 = arith.constant 0 : i32
    %c0_i32_1 = arith.constant 0 : i32
    %c0_i32_2 = arith.constant 0 : i32
    return %arg0, %c0_i32, %c0_i32_0, %c0_i32_1 : i32, i32, i32, i32
  }
}

module attributes {stable_mosaic.version = 11 : i64} {
  func.func @mha_kernel(%arg0: i32, %arg1: memref<16x32xbf16, #tpu.memory_space<vmem>>, %arg2: memref<32x32xbf16, #tpu.memory_space<vmem>>, %arg3: memref<32x64xbf16, #tpu.memory_space<vmem>>, %arg4: memref<32x128xbf16, #tpu.memory_space<vmem>>, %arg5: memref<64x64xbf16, #tpu.memory_space<vmem>>, %arg6: memref<1x64xf32, #tpu.memory_space<vmem>>, %arg7: memref<1x64xf32, #tpu.memory_space<vmem>>, %arg8: memref<1x64xf32, #tpu.memory_space<vmem>>, %arg9: memref<16x64xf32, #tpu.memory_space<vmem>>, %arg10: memref<2x4x8x16xf32, #tpu.memory_space<vmem>>) attributes {dimension_semantics = [#tpu.dimension_semantics<parallel>], iteration_bounds = array<i64: 2>, scalar_prefetch = 0 : i64, scratch_operands = 0 : i64, tpu.core_type = #tpu.core_type<tc>, window_params = [{transform_indices = @transform_0, window_bounds = array<i64: 16, 32>}, {transform_indices = @transform_1, window_bounds = array<i64: 32, 32>}, {pipeline_mode = #tpu.pipeline_mode<synchronous>, transform_indices = @transform_2, window_bounds = array<i64: 32, 64>}, {pipeline_mode = #tpu.pipeline_mode<synchronous>, transform_indices = @transform_3, window_bounds = array<i64: 32, 128>}, {pipeline_mode = #tpu.pipeline_mode<synchronous>, transform_indices = @transform_4, window_bounds = array<i64: 64, 64>}, {pipeline_mode = #tpu.pipeline_mode<synchronous>, transform_indices = @transform_5, window_bounds = array<i64: 1, 64>}, {pipeline_mode = #tpu.pipeline_mode<synchronous>, transform_indices = @transform_6, window_bounds = array<i64: 1, 64>}, {pipeline_mode = #tpu.pipeline_mode<synchronous>, transform_indices = @transform_7, window_bounds = array<i64: 1, 64>}, {transform_indices = @transform_8, window_bounds = array<i64: 16, 64>}, {transform_indices = @transform_9, window_bounds = array<i64: 2, 4, 8, 16>}]} {
    %c0 = arith.constant 0 : index
    %c0_0 = arith.constant 0 : index
    %0 = vector.load %arg1[%c0, %c0_0] : memref<16x32xbf16, #tpu.memory_space<vmem>>, vector<16x32xbf16>
    %c0_1 = arith.constant 0 : index
    %c0_2 = arith.constant 0 : index
    %1 = vector.load %arg3[%c0_1, %c0_2] : memref<32x64xbf16, #tpu.memory_space<vmem>>, vector<32x64xbf16>
    %cst = arith.constant dense<0.000000e+00> : vector<16x64xf32>
    %2 = tpu.matmul %0, %1, %cst {dimension_numbers = #tpu.dot_dimension_numbers<[1], [0], [0], [1], [0, 0, 1, 1], [], []>} : vector<16x32xbf16>, vector<32x64xbf16>, vector<16x64xf32> -> vector<16x64xf32>
    %c0_3 = arith.constant 0 : index
    %c0_4 = arith.constant 0 : index
    %3 = vector.load %arg2[%c0_3, %c0_4] : memref<32x32xbf16, #tpu.memory_space<vmem>>, vector<32x32xbf16>
    %c0_5 = arith.constant 0 : index
    %c0_6 = arith.constant 0 : index
    %4 = vector.load %arg4[%c0_5, %c0_6] : memref<32x128xbf16, #tpu.memory_space<vmem>>, vector<32x128xbf16>
    %cst_7 = arith.constant dense<0.000000e+00> : vector<32x128xf32>
    %5 = tpu.matmul %3, %4, %cst_7 {dimension_numbers = #tpu.dot_dimension_numbers<[1], [0], [0], [1], [0, 0, 1, 1], [], []>} : vector<32x32xbf16>, vector<32x128xbf16>, vector<32x128xf32> -> vector<32x128xf32>
    %6 = vector.shape_cast %2 : vector<16x64xf32> to vector<2x8x64xf32>
    %7 = vector.extract_strided_slice %5 {offsets = [0, 0], sizes = [32, 64], strides = [1, 1]} : vector<32x128xf32> to vector<32x64xf32>
    %8 = vector.shape_cast %7 : vector<32x64xf32> to vector<2x16x64xf32>
    %9 = vector.extract_strided_slice %5 {offsets = [0, 64], sizes = [32, 64], strides = [1, 1]} : vector<32x128xf32> to vector<32x64xf32>
    %10 = vector.shape_cast %9 : vector<32x64xf32> to vector<2x16x64xf32>
    %11 = vector.extract_strided_slice %6 {offsets = [0, 0, 0], sizes = [2, 8, 16], strides = [1, 1, 1]} : vector<2x8x64xf32> to vector<2x8x16xf32>
    %12 = arith.truncf %11 : vector<2x8x16xf32> to vector<2x8x16xbf16>
    %13 = vector.extract_strided_slice %8 {offsets = [0, 0, 0], sizes = [2, 16, 16], strides = [1, 1, 1]} : vector<2x16x64xf32> to vector<2x16x16xf32>
    %14 = arith.truncf %13 : vector<2x16x16xf32> to vector<2x16x16xbf16>
    %15 = vector.extract_strided_slice %10 {offsets = [0, 0, 0], sizes = [2, 16, 16], strides = [1, 1, 1]} : vector<2x16x64xf32> to vector<2x16x16xf32>
    %16 = arith.truncf %15 : vector<2x16x16xf32> to vector<2x16x16xbf16>
    "tpu.trace_start"() <{level = 10 : i32, message = "bqd,bkd->bqk"}> : () -> ()
    %cst_8 = arith.constant dense<0.000000e+00> : vector<2x8x16xf32>
    %17 = tpu.matmul %12, %14, %cst_8 {dimension_numbers = #tpu.dot_dimension_numbers<[2], [2], [1], [1], [0, 0, 0, 1, 1, 1], [0], [0]>} : vector<2x8x16xbf16>, vector<2x16x16xbf16>, vector<2x8x16xf32> -> vector<2x8x16xf32>
    "tpu.trace_stop"() : () -> ()
    %cst_9 = arith.constant dense<0xFF800000> : vector<2x8xf32>
    %18 = vector.multi_reduction <maximumf>, %17, %cst_9 [2] : vector<2x8x16xf32> to vector<2x8xf32>
    %19 = vector.shape_cast %18 : vector<2x8xf32> to vector<2x8x1xf32>
    %20 = vector.broadcast %19 : vector<2x8x1xf32> to vector<2x8x16xf32>
    %21 = arith.subf %17, %20 : vector<2x8x16xf32>
    %22 = math.exp %21 : vector<2x8x16xf32>
    %cst_10 = arith.constant dense<0.000000e+00> : vector<2x8xf32>
    %23 = vector.multi_reduction <add>, %22, %cst_10 [2] : vector<2x8x16xf32> to vector<2x8xf32>
    %24 = vector.shape_cast %23 : vector<2x8xf32> to vector<2x8x1xf32>
    %25 = tpu.reciprocal %24 {approx = true} : vector<2x8x1xf32> -> vector<2x8x1xf32>
    %26 = vector.broadcast %25 : vector<2x8x1xf32> to vector<2x8x16xf32>
    %27 = arith.mulf %22, %26 : vector<2x8x16xf32>
    %c0_11 = arith.constant 0 : index
    %c0_12 = arith.constant 0 : index
    %c0_13 = arith.constant 0 : index
    %c0_14 = arith.constant 0 : index
    %28 = vector.load %arg10[%c0_11, %c0_12, %c0_13, %c0_14] : memref<2x4x8x16xf32, #tpu.memory_space<vmem>>, vector<2x1x8x16xf32>
    %29 = vector.shape_cast %28 : vector<2x1x8x16xf32> to vector<2x8x16xf32>
    %30 = vector.shape_cast %27 : vector<2x8x16xf32> to vector<2x1x8x16xf32>
    tpu.vector_store %arg10[%c0_11, %c0_12, %c0_13, %c0_14], %30 {strides = array<i32>} : memref<2x4x8x16xf32, #tpu.memory_space<vmem>>, vector<2x1x8x16xf32>,
    %31 = arith.truncf %27 : vector<2x8x16xf32> to vector<2x8x16xbf16>
    "tpu.trace_start"() <{level = 10 : i32, message = "bqk,bkd->bqd"}> : () -> ()
    %cst_15 = arith.constant dense<0.000000e+00> : vector<2x8x16xf32>
    %32 = tpu.matmul %31, %16, %cst_15 {dimension_numbers = #tpu.dot_dimension_numbers<[2], [1], [1], [2], [0, 0, 0, 1, 1, 2], [0], [0]>} : vector<2x8x16xbf16>, vector<2x16x16xbf16>, vector<2x8x16xf32> -> vector<2x8x16xf32>
    "tpu.trace_stop"() : () -> ()
    %33 = vector.extract_strided_slice %6 {offsets = [0, 0, 16], sizes = [2, 8, 16], strides = [1, 1, 1]} : vector<2x8x64xf32> to vector<2x8x16xf32>
    %34 = arith.truncf %33 : vector<2x8x16xf32> to vector<2x8x16xbf16>
    %35 = vector.extract_strided_slice %8 {offsets = [0, 0, 16], sizes = [2, 16, 16], strides = [1, 1, 1]} : vector<2x16x64xf32> to vector<2x16x16xf32>
    %36 = arith.truncf %35 : vector<2x16x16xf32> to vector<2x16x16xbf16>
    %37 = vector.extract_strided_slice %10 {offsets = [0, 0, 16], sizes = [2, 16, 16], strides = [1, 1, 1]} : vector<2x16x64xf32> to vector<2x16x16xf32>
    %38 = arith.truncf %37 : vector<2x16x16xf32> to vector<2x16x16xbf16>
    "tpu.trace_start"() <{level = 10 : i32, message = "bqd,bkd->bqk"}> : () -> ()
    %cst_16 = arith.constant dense<0.000000e+00> : vector<2x8x16xf32>
    %39 = tpu.matmul %34, %36, %cst_16 {dimension_numbers = #tpu.dot_dimension_numbers<[2], [2], [1], [1], [0, 0, 0, 1, 1, 1], [0], [0]>} : vector<2x8x16xbf16>, vector<2x16x16xbf16>, vector<2x8x16xf32> -> vector<2x8x16xf32>
    "tpu.trace_stop"() : () -> ()
    %cst_17 = arith.constant dense<0xFF800000> : vector<2x8xf32>
    %40 = vector.multi_reduction <maximumf>, %39, %cst_17 [2] : vector<2x8x16xf32> to vector<2x8xf32>
    %41 = vector.shape_cast %40 : vector<2x8xf32> to vector<2x8x1xf32>
    %42 = vector.broadcast %41 : vector<2x8x1xf32> to vector<2x8x16xf32>
    %43 = arith.subf %39, %42 : vector<2x8x16xf32>
    %44 = math.exp %43 : vector<2x8x16xf32>
    %cst_18 = arith.constant dense<0.000000e+00> : vector<2x8xf32>
    %45 = vector.multi_reduction <add>, %44, %cst_18 [2] : vector<2x8x16xf32> to vector<2x8xf32>
    %46 = vector.shape_cast %45 : vector<2x8xf32> to vector<2x8x1xf32>
    %47 = tpu.reciprocal %46 {approx = true} : vector<2x8x1xf32> -> vector<2x8x1xf32>
    %48 = vector.broadcast %47 : vector<2x8x1xf32> to vector<2x8x16xf32>
    %49 = arith.mulf %44, %48 : vector<2x8x16xf32>
    %c0_19 = arith.constant 0 : index
    %c1 = arith.constant 1 : index
    %c0_20 = arith.constant 0 : index
    %c0_21 = arith.constant 0 : index
    %50 = vector.load %arg10[%c0_19, %c1, %c0_20, %c0_21] : memref<2x4x8x16xf32, #tpu.memory_space<vmem>>, vector<2x1x8x16xf32>
    %51 = vector.shape_cast %50 : vector<2x1x8x16xf32> to vector<2x8x16xf32>
    %52 = vector.shape_cast %49 : vector<2x8x16xf32> to vector<2x1x8x16xf32>
    tpu.vector_store %arg10[%c0_19, %c1, %c0_20, %c0_21], %52 {strides = array<i32>} : memref<2x4x8x16xf32, #tpu.memory_space<vmem>>, vector<2x1x8x16xf32>,
    %53 = arith.truncf %49 : vector<2x8x16xf32> to vector<2x8x16xbf16>
    "tpu.trace_start"() <{level = 10 : i32, message = "bqk,bkd->bqd"}> : () -> ()
    %cst_22 = arith.constant dense<0.000000e+00> : vector<2x8x16xf32>
    %54 = tpu.matmul %53, %38, %cst_22 {dimension_numbers = #tpu.dot_dimension_numbers<[2], [1], [1], [2], [0, 0, 0, 1, 1, 2], [0], [0]>} : vector<2x8x16xbf16>, vector<2x16x16xbf16>, vector<2x8x16xf32> -> vector<2x8x16xf32>
    "tpu.trace_stop"() : () -> ()
    %55 = vector.extract_strided_slice %6 {offsets = [0, 0, 32], sizes = [2, 8, 16], strides = [1, 1, 1]} : vector<2x8x64xf32> to vector<2x8x16xf32>
    %56 = arith.truncf %55 : vector<2x8x16xf32> to vector<2x8x16xbf16>
    %57 = vector.extract_strided_slice %8 {offsets = [0, 0, 32], sizes = [2, 16, 16], strides = [1, 1, 1]} : vector<2x16x64xf32> to vector<2x16x16xf32>
    %58 = arith.truncf %57 : vector<2x16x16xf32> to vector<2x16x16xbf16>
    %59 = vector.extract_strided_slice %10 {offsets = [0, 0, 32], sizes = [2, 16, 16], strides = [1, 1, 1]} : vector<2x16x64xf32> to vector<2x16x16xf32>
    %60 = arith.truncf %59 : vector<2x16x16xf32> to vector<2x16x16xbf16>
    "tpu.trace_start"() <{level = 10 : i32, message = "bqd,bkd->bqk"}> : () -> ()
    %cst_23 = arith.constant dense<0.000000e+00> : vector<2x8x16xf32>
    %61 = tpu.matmul %56, %58, %cst_23 {dimension_numbers = #tpu.dot_dimension_numbers<[2], [2], [1], [1], [0, 0, 0, 1, 1, 1], [0], [0]>} : vector<2x8x16xbf16>, vector<2x16x16xbf16>, vector<2x8x16xf32> -> vector<2x8x16xf32>
    "tpu.trace_stop"() : () -> ()
    %cst_24 = arith.constant dense<0xFF800000> : vector<2x8xf32>
    %62 = vector.multi_reduction <maximumf>, %61, %cst_24 [2] : vector<2x8x16xf32> to vector<2x8xf32>
    %63 = vector.shape_cast %62 : vector<2x8xf32> to vector<2x8x1xf32>
    %64 = vector.broadcast %63 : vector<2x8x1xf32> to vector<2x8x16xf32>
    %65 = arith.subf %61, %64 : vector<2x8x16xf32>
    %66 = math.exp %65 : vector<2x8x16xf32>
    %cst_25 = arith.constant dense<0.000000e+00> : vector<2x8xf32>
    %67 = vector.multi_reduction <add>, %66, %cst_25 [2] : vector<2x8x16xf32> to vector<2x8xf32>
    %68 = vector.shape_cast %67 : vector<2x8xf32> to vector<2x8x1xf32>
    %69 = tpu.reciprocal %68 {approx = true} : vector<2x8x1xf32> -> vector<2x8x1xf32>
    %70 = vector.broadcast %69 : vector<2x8x1xf32> to vector<2x8x16xf32>
    %71 = arith.mulf %66, %70 : vector<2x8x16xf32>
    %c0_26 = arith.constant 0 : index
    %c2 = arith.constant 2 : index
    %c0_27 = arith.constant 0 : index
    %c0_28 = arith.constant 0 : index
    %72 = vector.load %arg10[%c0_26, %c2, %c0_27, %c0_28] : memref<2x4x8x16xf32, #tpu.memory_space<vmem>>, vector<2x1x8x16xf32>
    %73 = vector.shape_cast %72 : vector<2x1x8x16xf32> to vector<2x8x16xf32>
    %74 = vector.shape_cast %71 : vector<2x8x16xf32> to vector<2x1x8x16xf32>
    tpu.vector_store %arg10[%c0_26, %c2, %c0_27, %c0_28], %74 {strides = array<i32>} : memref<2x4x8x16xf32, #tpu.memory_space<vmem>>, vector<2x1x8x16xf32>,
    %75 = arith.truncf %71 : vector<2x8x16xf32> to vector<2x8x16xbf16>
    "tpu.trace_start"() <{level = 10 : i32, message = "bqk,bkd->bqd"}> : () -> ()
    %cst_29 = arith.constant dense<0.000000e+00> : vector<2x8x16xf32>
    %76 = tpu.matmul %75, %60, %cst_29 {dimension_numbers = #tpu.dot_dimension_numbers<[2], [1], [1], [2], [0, 0, 0, 1, 1, 2], [0], [0]>} : vector<2x8x16xbf16>, vector<2x16x16xbf16>, vector<2x8x16xf32> -> vector<2x8x16xf32>
    "tpu.trace_stop"() : () -> ()
    %77 = vector.extract_strided_slice %6 {offsets = [0, 0, 48], sizes = [2, 8, 16], strides = [1, 1, 1]} : vector<2x8x64xf32> to vector<2x8x16xf32>
    %78 = arith.truncf %77 : vector<2x8x16xf32> to vector<2x8x16xbf16>
    %79 = vector.extract_strided_slice %8 {offsets = [0, 0, 48], sizes = [2, 16, 16], strides = [1, 1, 1]} : vector<2x16x64xf32> to vector<2x16x16xf32>
    %80 = arith.truncf %79 : vector<2x16x16xf32> to vector<2x16x16xbf16>
    %81 = vector.extract_strided_slice %10 {offsets = [0, 0, 48], sizes = [2, 16, 16], strides = [1, 1, 1]} : vector<2x16x64xf32> to vector<2x16x16xf32>
    %82 = arith.truncf %81 : vector<2x16x16xf32> to vector<2x16x16xbf16>
    "tpu.trace_start"() <{level = 10 : i32, message = "bqd,bkd->bqk"}> : () -> ()
    %cst_30 = arith.constant dense<0.000000e+00> : vector<2x8x16xf32>
    %83 = tpu.matmul %78, %80, %cst_30 {dimension_numbers = #tpu.dot_dimension_numbers<[2], [2], [1], [1], [0, 0, 0, 1, 1, 1], [0], [0]>} : vector<2x8x16xbf16>, vector<2x16x16xbf16>, vector<2x8x16xf32> -> vector<2x8x16xf32>
    "tpu.trace_stop"() : () -> ()
    %cst_31 = arith.constant dense<0xFF800000> : vector<2x8xf32>
    %84 = vector.multi_reduction <maximumf>, %83, %cst_31 [2] : vector<2x8x16xf32> to vector<2x8xf32>
    %85 = vector.shape_cast %84 : vector<2x8xf32> to vector<2x8x1xf32>
    %86 = vector.broadcast %85 : vector<2x8x1xf32> to vector<2x8x16xf32>
    %87 = arith.subf %83, %86 : vector<2x8x16xf32>
    %88 = math.exp %87 : vector<2x8x16xf32>
    %cst_32 = arith.constant dense<0.000000e+00> : vector<2x8xf32>
    %89 = vector.multi_reduction <add>, %88, %cst_32 [2] : vector<2x8x16xf32> to vector<2x8xf32>
    %90 = vector.shape_cast %89 : vector<2x8xf32> to vector<2x8x1xf32>
    %91 = tpu.reciprocal %90 {approx = true} : vector<2x8x1xf32> -> vector<2x8x1xf32>
    %92 = vector.broadcast %91 : vector<2x8x1xf32> to vector<2x8x16xf32>
    %93 = arith.mulf %88, %92 : vector<2x8x16xf32>
    %c0_33 = arith.constant 0 : index
    %c3 = arith.constant 3 : index
    %c0_34 = arith.constant 0 : index
    %c0_35 = arith.constant 0 : index
    %94 = vector.load %arg10[%c0_33, %c3, %c0_34, %c0_35] : memref<2x4x8x16xf32, #tpu.memory_space<vmem>>, vector<2x1x8x16xf32>
    %95 = vector.shape_cast %94 : vector<2x1x8x16xf32> to vector<2x8x16xf32>
    %96 = vector.shape_cast %93 : vector<2x8x16xf32> to vector<2x1x8x16xf32>
    tpu.vector_store %arg10[%c0_33, %c3, %c0_34, %c0_35], %96 {strides = array<i32>} : memref<2x4x8x16xf32, #tpu.memory_space<vmem>>, vector<2x1x8x16xf32>,
    %97 = arith.truncf %93 : vector<2x8x16xf32> to vector<2x8x16xbf16>
    "tpu.trace_start"() <{level = 10 : i32, message = "bqk,bkd->bqd"}> : () -> ()
    %cst_36 = arith.constant dense<0.000000e+00> : vector<2x8x16xf32>
    %98 = tpu.matmul %97, %82, %cst_36 {dimension_numbers = #tpu.dot_dimension_numbers<[2], [1], [1], [2], [0, 0, 0, 1, 1, 2], [0], [0]>} : vector<2x8x16xbf16>, vector<2x16x16xbf16>, vector<2x8x16xf32> -> vector<2x8x16xf32>
    "tpu.trace_stop"() : () -> ()
    %99 = tpu.concatenate %32, %54, %76, %98 in 2 : vector<2x8x16xf32>, vector<2x8x16xf32>, vector<2x8x16xf32>, vector<2x8x16xf32> -> vector<2x8x64xf32>
    %100 = vector.shape_cast %99 : vector<2x8x64xf32> to vector<16x64xf32>
    %101 = arith.truncf %100 : vector<16x64xf32> to vector<16x64xbf16>
    %c0_37 = arith.constant 0 : index
    %c0_38 = arith.constant 0 : index
    %102 = vector.load %arg5[%c0_37, %c0_38] : memref<64x64xbf16, #tpu.memory_space<vmem>>, vector<64x64xbf16>
    %cst_39 = arith.constant dense<0.000000e+00> : vector<16x64xf32>
    %103 = tpu.matmul %101, %102, %cst_39 {dimension_numbers = #tpu.dot_dimension_numbers<[1], [0], [0], [1], [0, 0, 1, 1], [], []>} : vector<16x64xbf16>, vector<64x64xbf16>, vector<16x64xf32> -> vector<16x64xf32>
    %c0_40 = arith.constant 0 : index
    %c0_41 = arith.constant 0 : index
    %104 = vector.load %arg6[%c0_40, %c0_41] : memref<1x64xf32, #tpu.memory_space<vmem>>, vector<1x64xf32>
    %105 = vector.broadcast %104 : vector<1x64xf32> to vector<16x64xf32>
    %106 = arith.addf %103, %105 : vector<16x64xf32>
    %cst_42 = arith.constant dense<0.000000e+00> : vector<16xf32>
    %107 = vector.multi_reduction <add>, %106, %cst_42 [1] : vector<16x64xf32> to vector<16xf32>
    %108 = vector.shape_cast %107 : vector<16xf32> to vector<16x1xf32>
    %cst_43 = arith.constant 6.400000e+01 : f32
    %109 = vector.broadcast %cst_43 : f32 to vector<16x1xf32>
    %110 = arith.divf %108, %109 : vector<16x1xf32>
    %111 = vector.broadcast %110 : vector<16x1xf32> to vector<16x64xf32>
    %112 = arith.subf %106, %111 : vector<16x64xf32>
    %113 = arith.mulf %112, %112 : vector<16x64xf32>
    %cst_44 = arith.constant dense<0.000000e+00> : vector<16xf32>
    %114 = vector.multi_reduction <add>, %113, %cst_44 [1] : vector<16x64xf32> to vector<16xf32>
    %115 = vector.shape_cast %114 : vector<16xf32> to vector<16x1xf32>
    %cst_45 = arith.constant 6.400000e+01 : f32
    %116 = vector.broadcast %cst_45 : f32 to vector<16x1xf32>
    %117 = arith.divf %115, %116 : vector<16x1xf32>
    %118 = vector.broadcast %110 : vector<16x1xf32> to vector<16x64xf32>
    %119 = arith.subf %106, %118 : vector<16x64xf32>
    %cst_46 = arith.constant 9.99999974E-6 : f32
    %120 = vector.broadcast %cst_46 : f32 to vector<16x1xf32>
    %121 = arith.addf %117, %120 : vector<16x1xf32>
    %122 = math.rsqrt %121 : vector<16x1xf32>
    %123 = vector.broadcast %122 : vector<16x1xf32> to vector<16x64xf32>
    %124 = arith.mulf %119, %123 : vector<16x64xf32>
    %c0_47 = arith.constant 0 : index
    %c0_48 = arith.constant 0 : index
    %125 = vector.load %arg7[%c0_47, %c0_48] : memref<1x64xf32, #tpu.memory_space<vmem>>, vector<1x64xf32>
    %126 = vector.broadcast %125 : vector<1x64xf32> to vector<16x64xf32>
    %127 = arith.mulf %124, %126 : vector<16x64xf32>
    %c0_49 = arith.constant 0 : index
    %c0_50 = arith.constant 0 : index
    %128 = vector.load %arg8[%c0_49, %c0_50] : memref<1x64xf32, #tpu.memory_space<vmem>>, vector<1x64xf32>
    %129 = vector.broadcast %128 : vector<1x64xf32> to vector<16x64xf32>
    %130 = arith.addf %127, %129 : vector<16x64xf32>
    %c0_51 = arith.constant 0 : index
    %c0_52 = arith.constant 0 : index
    %131 = vector.load %arg9[%c0_51, %c0_52] : memref<16x64xf32, #tpu.memory_space<vmem>>, vector<16x64xf32>
    tpu.vector_store %arg9[%c0_51, %c0_52], %130 {strides = array<i32>} : memref<16x64xf32, #tpu.memory_space<vmem>>, vector<16x64xf32>,
    return
  }
  func.func @transform_0(%arg0: i32) -> (i32, i32) {
    %c0_i32 = arith.constant 0 : i32
    %c0_i32_0 = arith.constant 0 : i32
    return %arg0, %c0_i32 : i32, i32
  }
  func.func @transform_1(%arg0: i32) -> (i32, i32) {
    %c0_i32 = arith.constant 0 : i32
    %c0_i32_0 = arith.constant 0 : i32
    return %arg0, %c0_i32 : i32, i32
  }
  func.func @transform_2(%arg0: i32) -> (i32, i32) {
    %c0_i32 = arith.constant 0 : i32
    %c0_i32_0 = arith.constant 0 : i32
    %c0_i32_1 = arith.constant 0 : i32
    return %c0_i32, %c0_i32_0 : i32, i32
  }
  func.func @transform_3(%arg0: i32) -> (i32, i32) {
    %c0_i32 = arith.constant 0 : i32
    %c0_i32_0 = arith.constant 0 : i32
    %c0_i32_1 = arith.constant 0 : i32
    return %c0_i32, %c0_i32_0 : i32, i32
  }
  func.func @transform_4(%arg0: i32) -> (i32, i32) {
    %c0_i32 = arith.constant 0 : i32
    %c0_i32_0 = arith.constant 0 : i32
    %c0_i32_1 = arith.constant 0 : i32
    return %c0_i32, %c0_i32_0 : i32, i32
  }
  func.func @transform_5(%arg0: i32) -> (i32, i32) {
    %c0_i32 = arith.constant 0 : i32
    %c0_i32_0 = arith.constant 0 : i32
    %c0_i32_1 = arith.constant 0 : i32
    return %c0_i32, %c0_i32_0 : i32, i32
  }
  func.func @transform_6(%arg0: i32) -> (i32, i32) {
    %c0_i32 = arith.constant 0 : i32
    %c0_i32_0 = arith.constant 0 : i32
    %c0_i32_1 = arith.constant 0 : i32
    return %c0_i32, %c0_i32_0 : i32, i32
  }
  func.func @transform_7(%arg0: i32) -> (i32, i32) {
    %c0_i32 = arith.constant 0 : i32
    %c0_i32_0 = arith.constant 0 : i32
    %c0_i32_1 = arith.constant 0 : i32
    return %c0_i32, %c0_i32_0 : i32, i32
  }
  func.func @transform_8(%arg0: i32) -> (i32, i32) {
    %c0_i32 = arith.constant 0 : i32
    %c0_i32_0 = arith.constant 0 : i32
    return %arg0, %c0_i32 : i32, i32
  }
  func.func @transform_9(%arg0: i32) -> (i32, i32, i32, i32) {
    %c0_i32 = arith.constant 0 : i32
    %c0_i32_0 = arith.constant 0 : i32
    %c0_i32_1 = arith.constant 0 : i32
    %c0_i32_2 = arith.constant 0 : i32
    return %arg0, %c0_i32, %c0_i32_0, %c0_i32_1 : i32, i32, i32, i32
  }
}

</mosaic_0001>

<bundles_post_ra>
// kernel: tpu_custom_call.1
= control target key start
LH: loop header
LB: loop body
LE: loop exit
PB: predicated region body
PF: predicated region fallthrough
CT: control target
= control target key end

     0   :  { %15 = vsyncpa [#allocation3], 0  ;;  %s2787_s0 = inlined_call_operand.vmem [shape: bf16[32,32], index: 0, kind: input, shape index: {}]   ;;  %s2788_s1 = inlined_call_operand.vmem [shape: bf16[64,32], index: 1, kind: input, shape index: {}]   ;;  %s2789_s2 = inlined_call_operand.hbm [shape: bf16[32,64], index: 2, kind: input, shape index: {}]   ;;  %s2790_s3 = inlined_call_operand.hbm [shape: bf16[32,128], index: 3, kind: input, shape index: {}]   ;;  %s2791_s4 = inlined_call_operand.vmem [shape: bf16[64,64], index: 4, kind: input, shape index: {}]   ;;  %s2792_s5 = inlined_call_operand.vmem [shape: f32[1,64], index: 5, kind: input, shape index: {}]   ;;  %s2793_s6 = inlined_call_operand.vmem [shape: f32[1,64], index: 6, kind: input, shape index: {}]   ;;  %s2794_s7 = inlined_call_operand.vmem [shape: f32[1,64], index: 7, kind: input, shape index: {}]   ;;  %s2795_s8 = inlined_call_operand.hbm [shape: f32[32,64], index: 8, kind: output, shape index: {0}]   ;;  %s2796_s9 = inlined_call_operand.hbm [shape: f32[4,4,8,16], index: 9, kind: output, shape index: {1}]  }
   0x1   :  { %16 = vsyncpa [#allocation6], 0 }
   0x2   :  { %17 = vsyncpa [#allocation4], 0 }
   0x3   :  { %19 = vsyncpa [#allocation4 + $0x1], 0 }
   0x4   :  { %20 = vsyncpa [#allocation9], 0 }
   0x5   :  { %22 = vsyncpa [#allocation9 + $0x1], 0  ;;  %s2356_s30 = smov 0   ;;  %s2358_s10 = smov 0  }
   0x6   :  { %s2360_s11 = smov 0   ;;  %s2362_s12 = smov 0  }
   0x7 LB: > { %2803 = sst [smem:[#allocation14_spill]] %s2283_s11  ;;  %s2377_s13 = sadd.s32 4294967295, %s2287_s12   ;;  %s2287_s12 = sphi %s2362_s12, %s2817_s12   ;;  %s2283_s11 = sphi %s2360_s11, %s2819_s11   ;;  %s2279_s10 = sphi %s2358_s10, %s2821_s10   ;;  %s2275_s30 = sphi %s2356_s30, %s2820_s30  }
   0x8   : > { %s1755_s14 = sadd.s32 4294967294, %s2287_s12   ;;  %s2381_s15 = sadd.s32 1, %s2287_s12  }
   0x9   : > { %2804 = sst [smem:[#allocation15_spill]] %s2381_s15  ;;  %s213_s16 = sadd.s32 1, %s2283_s11 }
   0xa   : > { %s210_s17 = ssub.s32 %s2287_s12, %s2381_s15  ;;  %p223_p0 = scmp.ne.s32.totalorder %s2283_s11, %s2279_s10 }
   0xb   : > { %p211_p1 = scmp.eq.s32.totalorder %s210_s17, 0  ;;  %p224_p2 = scmp.eq.s32.totalorder %s2377_s13, 1 }
   0xc   : > { %p229_p3 = scmp.ne.s32.totalorder %s2279_s10, %s2275_s30  ;;  %p230_p4 = scmp.eq.s32.totalorder %s1755_s14, 1 }
   0xd   : > { %s2392_s18 = scalar_select %p211_p1, %s2283_s11, %s213_s16  }
   0xe   : > { %p2394_p5 = por %p224_p2, %p223_p0  ;;  %p2398_p6 = por %p230_p4, %p229_p3 }
   0xf   : > { %2805 = sst [smem:[#allocation16_spill]] %s2392_s18  ;;  %p1756_p7 = scmp.ge.s32.totalorder %s2287_s12, 1 }
  0x10   : > { %s2806_s19 = scalar_select %p2394_p5, 1, 0 }
  0x11   : > { %s2807_s20 = scalar_select %p2398_p6, 1, 0 }
  0x12   : > { %p263_p8 = scmp.lt.s32.totalorder %s2287_s12, 3  ;;  %p2797_p9 = scmp.eq.s32.totalorder %s2377_s13, 0 }
  0x13   : > { %s2289_s22 = smov [#allocation2]   ;;  %s2290_s25 = smov [#allocation5]  }
  0x14   : > { %p2405_p10 = pnand %p1756_p7, %p263_p8  ;;  %s275_s23 = sshll.u32 %s2289_s22, 4  ;;  %s276_s23 = int_to_ptr.vmem [resolvable:$true] %s275_s23 }
  0x15   : > { %s288_s26 = sshll.u32 %s2290_s25, 4  ;;  %s2129_s29 = scalar_lea.hbm %s2789_s2, 256  ;;  %s2417_s26 = int_to_ptr.vmem [resolvable:$true] %s288_s26 }
  0x16   : > { %s2808_s21 = scalar_select %p2405_p10, 1, 0 }
  0x17   : > { %p2001_p11 = pneg %p2405_p10  ;;  %p2130_p13 = scmp.ne.s32.totalorder %s2789_s2, %s2129_s29 }
  0x18   : > { %p2136_p3 = scmp.lt.u32.totalorder %s2129_s29, %s2789_s2 }
  0x19   : > { %p2413_p12 = pnand %p2797_p9, %p2001_p11 }
  0x1b   : > { %p2131_p0 = pneg %p2413_p12 }
  0x1d   : > { %p2132_p1 = pnand %p2131_p0, %p2130_p13 }
  0x1f   : > { %p2133_p2 = pneg %p2132_p1 }
  0x21   : > { %p2138_p4 = pnand %p2136_p3, %p2133_p2 }
  0x23   : > { %2141 = shalt.err (!%p2138_p4)
}
  0x24   : > { %s2142_s25 = scalar_lea.vmem %s276_s23, 256  ;;  %p2150_p9 = scmp.lt.s32.totalorder %s276_s23, %s276_s23 }
  0x25   : > { %p2143_p7 = scmp.ne.s32.totalorder %s276_s23, %s2142_s25  ;;  %p2151_p6 = scmp.lt.s32.totalorder %s2142_s25, %s2142_s25 }
  0x27   : > { %p2145_p8 = pnand %p2143_p7, %p2131_p0  ;;  %p2152_p5 = por %p2151_p6, %p2150_p9 }
  0x29   : > { %p2146_p11 = pneg %p2145_p8 }
  0x2b   : > { %p2153_p10 = pnand %p2152_p5, %p2146_p11 }
  0x2d   : > { %2156 = shalt.err (!%p2153_p10)
}
  0x2e   : > { %s2291_s27 = smov 64   ;;  %s2292_s28 = smov 4  }
  0x2f   : > { %2004 = dma.hbm_to_vmem [thread:$0]  (!%p2413_p12), %s2789_s2, 256, %s276_s23, [#allocation3], %s2291_s27, %s2291_s27, %s2292_s28  }
  0x30   : > { %s2157_s22 = scalar_lea.hbm %s2790_s3, 256 }
  0x31   : > { %p2158_p13 = scmp.ne.s32.totalorder %s2790_s3, %s2157_s22  ;;  %p2164_p9 = scmp.lt.u32.totalorder %s2157_s22, %s2790_s3 }
  0x33   : > { %p2160_p5 = pnand %p2158_p13, %p2131_p0 }
  0x35   : > { %p2161_p6 = pneg %p2160_p5 }
  0x37   : > { %p2166_p10 = pnand %p2164_p9, %p2161_p6 }
  0x39   : > { %2169 = shalt.err (!%p2166_p10)
}
  0x3a   : > { %s2170_s23 = scalar_lea.vmem %s2417_s26, 256  ;;  %p2178_p4 = scmp.lt.s32.totalorder %s2417_s26, %s2417_s26 }
  0x3b   : > { %p2171_p1 = scmp.ne.s32.totalorder %s2417_s26, %s2170_s23  ;;  %p2179_p7 = scmp.lt.s32.totalorder %s2170_s23, %s2170_s23 }
  0x3d   : > { %p2173_p2 = pnand %p2171_p1, %p2131_p0  ;;  %p2180_p8 = por %p2179_p7, %p2178_p4 }
  0x3f   : > { %p2174_p3 = pneg %p2173_p2 }
  0x41   : > { %p2181_p11 = pnand %p2180_p8, %p2174_p3 }
  0x43   : > { %2184 = shalt.err (!%p2181_p11)
}
  0x44   : > { %2007 = dma.hbm_to_vmem [thread:$0]  (!%p2413_p12), %s2790_s3, 256, %s2417_s26, [#allocation6], %s2291_s27, %s2291_s27, %s2292_s28  }
  0x45   : > { %p2810_p13 = scmp.ne.s32.totalorder %s2808_s21, 0 }
  0x46   : > { %p2811_p5 = scmp.eq.s32.totalorder (!%p2810_p13), %s2377_s13, 0 }
  0x47   : > { %334 = sbr.rel (%p2810_p13) target bundleno = 3349 (0xd15), region = 52 }
  0x4e   : > { %2258 = dma.done.wait (%p2811_p5), [#allocation3], 256   ;;  %p2812_p0 = pmov %p2811_p5 }
  0x50   : > { %2260 = vsyncadd (%p2812_p0), [#allocation3], 4294967040  ;;  %p2813_p6 = pmov %p2812_p0 }
  0x51   : > { %p2814_p9 = pmov %p2812_p0 }
  0x52   : > { %2262 = dma.done.wait (%p2813_p6), [#allocation6], 256  }
  0x53   : > { %2264 = vsyncadd (%p2814_p9), [#allocation6], 4294967040  ;;  %s1765_s18 = sshll.u32 %s2377_s13, 1  ;;  %v2293_v0 = vmov 0.0   ;;  %vm2294_vm0 = vmmov 0   ;;  %s1767_s21 = sshll.u32 %s2377_s13, 2 }
  0x54   : > { %1865 = vmatprep.subr.bf16.mxu1 %v2293_v0  ;;  %1869 = vmatprep.mubr.msk.bf16.mxu1 %vm2294_vm0, %v2293_v0  ;;  %p385_p12 = scmp.lt.s32.totalorder %s1765_s18, 3  ;;  %p391_p10 = scmp.lt.s32.totalorder %s1767_s21, 7  ;;  %v2082_v1 = vld [vmem:[#allocation2] sm:$0xff]   ;;  %v2083_v2 = vld [vmem:[#allocation2 + $0x8] sm:$0xff]   ;;  %v2085_v3 = vld [vmem:[#allocation5] sm:$0xff]   ;;  %vm422_vm1 = vcmask 261120  }
  0x55   : > { %1881 = vmatprep.subr.bf16.mxu0 %v2293_v0  ;;  %1883 = vmatprep.mubr.msk.bf16.mxu0 %vm2294_vm0, %v2293_v0  ;;  %v2086_v5 = vld [vmem:[#allocation5 + $0x8] sm:$0xff]   ;;  %vm556_vm2 = vcmask 130048   ;;  %s2295_s22 = smov 64   ;;  %s2296_s25 = smov 112   ;;  %vm1456_vm3 = vcmask 392192   ;;  %vm1499_vm4 = vcmask 523264  }
  0x56   : > { %s2823_s18 = smov (!%p385_p12, %s1765_s18), 3  ;;  %s2825_s21 = smov (!%p391_p10, %s1767_s21), 7  ;;  %1866 = vmatpush3.bf16.msra.mxu1 %v2082_v1 }
  0x57   : > { %s1766_s24 = sshll.u32 %s2823_s18, 2  ;;  %s1768_s26 = sshll.u32 %s2825_s21, 2  ;;  %1867 = vmatprep.subr.bf16.mxu1 %v2293_v0 }
  0x58   : > { %s388_s29 = scalar_lea.vmem %s2787_s0, %s1766_s24  ;;  %s394_s17 = scalar_lea.vmem %s2788_s1, %s1768_s26 }
  0x59   : > { %v2084_v4 = vld [vmem:[%s388_s29] sm:$0xff]   ;;  %v2088_v7 = vld [vmem:[%s394_s17 + $0x8] sm:$0xff]   ;;  %s2538_s23 = sand.u32 1, %s2279_s10   ;;  %s2297_s18 = smov 48  }
  0x5a   : > { %1868 = vmatpush3.bf16.msra.mxu1 %v2083_v2  ;;  %v2087_v6 = vld [vmem:[%s394_s17] sm:$0xff]   ;;  %s1764_s11 = sshll.u32 %s2538_s23, 6  ;;  %s2298_s21 = smov 96  }
  0x5b   : > { %1873 = vmatprep.subr.bf16.mxu1 %v2085_v3  ;;  %s2541_s15 = scalar_lea.vmem [#allocation8], %s1764_s11  ;;  %s2299_s24 = smov 32  }
  0x5c   : > { %s2300_s26 = smov 80   ;;  %s2301_s27 = smov 16  }
  0x5d   : > { %1870 = vmatmul.mubr.msk.bf16.vlgmr.msra.gmra.mrb[0].mxu1 %vm422_vm1, %v2084_v4  ;;  %s1627_s29 = sshll.u32 %s2541_s15, 4  ;;  %s1597_s14 = scalar_lea.sflag [#allocation9], %s2538_s23  ;;  %s2697_s29 = int_to_ptr.vmem [resolvable:$true] %s1627_s29 }
  0x5e   : > { %1874 = vmatpush3.bf16.msra.mxu1 %v2085_v3  ;;  %1877 = vmatprep.mubr.msk.bf16.mxu1 %vm422_vm1, %v2087_v6  ;;  %s2185_s16 = scalar_lea.vmem %s2697_s29, 1024  ;;  %p2815_p2 = scmp.ne.s32.totalorder %s2806_s19, 0 }
  0x5f   : > { %1875 = vmatprep.subr.bf16.mxu1 %v2086_v5  ;;  %p2186_p1 = scmp.ne.s32.totalorder %s2697_s29, %s2185_s16  ;;  %s2302_s17 = smov [#allocation8]  }
  0x61   : > { %p2187_p3 = pnand %p2186_p1, %p2815_p2 }
  0x62   : > { %1876 = vmatpush3.bf16.msra.mxu1 %v2086_v5 }
  0x63   : > { %1887 = vmatprep.subr.bf16.mxu1 %v2293_v0  ;;  %p2188_p4 = pneg %p2187_p3 }
  0x65   : > { %1878 = vmatmul.mubr.msk.bf16.vlgmr.msra.gmra.mrb[4].mxu1 %vm422_vm1, %v2088_v7 }
  0x66   : > { %1889 = vmatprep.mubr.msk.bf16.mxu1 %vm2294_vm0, %v2293_v0 }
 0x130   : > { %v460_v8 = vpop.f32.mrb[0].mxu1 }
 0x131   : > { %v1871_v9 = vpop.f32.mrb[1].mxu1  ;;  %v2513_v21 = vpack.c.bf16 %v460_v8, %v460_v8 }
 0x132   : > { %v463_v10 = vpop.f32.mrb[2].mxu1 }
 0x133   : > { %v1872_v11 = vpop.f32.mrb[3].mxu1  ;;  %v2511_v20 = vpack.c.bf16 %v463_v10, %v463_v10 }
 0x138   : > { %v1879_v12 = vpop.f32.mrb[4].mxu1 }
 0x139   : > { %v537_v13 = vpop.f32.mrb[5].mxu1 }
 0x13a   : > { %v1880_v14 = vpop.f32.mrb[6].mxu1 }
 0x13b   : > { %v2497_v15 = vpack.c.bf16 %v1880_v14, %v1879_v12  ;;  %v540_v16 = vpop.f32.mrb[7].mxu1 }
 0x13c   : > { %v2499_v17 = vpack.c.bf16 %v540_v16, %v537_v13 }
 0x13d   : > { %723 = vrot.lane.b32.xlu1 %v2497_v15, %s2295_s22  ;;  %v607_v18 = vsel %vm556_vm2, %v2497_v15, 0 }
 0x13e   : > { %1888 = vmatpush3.bf16.xpose.msra.mxu1 %v607_v18  ;;  %v561_v19 = vsel %vm556_vm2, %v2499_v17, 0 }
 0x13f   : > { %1882 = vmatpush3.bf16.xpose.msra.mxu0 %v561_v19  ;;  %1899 = vmatprep.subr.bf16.mxu1 %v2293_v0 }
 0x140   : > { %1893 = vmatprep.subr.bf16.mxu0 %v2293_v0 }
 0x141   : > { %772 = vrot.lane.b32.xlu1 %v2499_v17, %s2296_s25 }
 0x145   : > { %1890 = vmatmul.mubr.msk.bf16.vlgmr.msra.gmra.mrb[8].mxu1 %vm556_vm2, %v2511_v20 }
 0x146   : > { %1884 = vmatmul.mubr.msk.bf16.vlgmr.msra.gmra.mrb[0].mxu0 %vm556_vm2, %v2513_v21  ;;  %1901 = vmatprep.mubr.msk.bf16.mxu1 %vm2294_vm0, %v2293_v0 }
 0x147   : > { %1895 = vmatprep.mubr.msk.bf16.mxu0 %vm2294_vm0, %v2293_v0 }
 0x1af   : > { %v724_v22 = vpop.permute.xlu1 %723 }
 0x1b0   : > { %1900 = vmatpush3.bf16.msra.mxu1 %v724_v22 }
 0x1b1   : > { %1911 = vmatprep.subr.bf16.mxu1 %v2293_v0 }
 0x1b3   : > { %v773_v44 = vpop.permute.xlu1 %772 }
 0x1b4   : > { %v778_v55 = vsel %vm556_vm2, %v773_v44, 0 }
 0x218   : > { %v643_v23 = vpop.f32.mrb[8].mxu1 }
 0x219   : > { %v597_v24 = vpop.f32.mrb[0].mxu0  ;;  %v1891_v25 = vpop.f32.mrb[9].mxu1  ;;  %v652_v32 = vsel %vm556_vm2, %v643_v23, -inf }
 0x21a   : > { %v1885_v26 = vpop.f32.mrb[1].mxu0  ;;  %v646_v27 = vpop.f32.mrb[10].mxu1  ;;  %v649_v28 = vsel %vm556_vm2, %v597_v24, -inf }
 0x21b   : > { %v1892_v29 = vpop.f32.mrb[11].mxu1  ;;  %650 = vmax.xlane.f32.xlu0 %v649_v28  ;;  %v600_v30 = vpop.f32.mrb[2].mxu0 }
 0x21c   : > { %v1886_v31 = vpop.f32.mrb[3].mxu0 }
 0x21f   : > { %653 = vmax.xlane.f32.xlu0 %v652_v32 }
 0x235   : > { %676 = vrot.lane.b32.xlu0 %v2499_v17, %s2295_s22  ;;  %s2189_s22 = sshll.u32 %s2302_s17, 4  ;;  %s2190_s22 = int_to_ptr.vmem [resolvable:$false] %s2189_s22 }
 0x236   : > { %p2192_p7 = scmp.lt.s32.totalorder %s2697_s29, %s2190_s22 }
 0x239   : > { %770 = vrot.lane.b32.xlu0 %v2513_v21, %s2296_s25 }
 0x2a8   : > { %v651_v33 = vpop.xlane.xlu0 %650 }
 0x2a9   : > { %v655_v34 = vsub.f32 %v597_v24, %v651_v33 }
 0x2ab   : > { %v657_v37 = vmul.f32 1.442695, %v655_v34 }
 0x2ac   : > { %v654_v35 = vpop.xlane.xlu0 %653 }
 0x2ad   : > { %v656_v36 = vsub.f32 %v643_v23, %v654_v35 }
 0x2af   : > { %v659_v38 = vmul.f32 1.442695, %v656_v36 }
 0x2b0   : > { %v677_v39 = vpop.permute.xlu0 %676 }
 0x2b1   : > { %2093 = vpow2.f32 %v659_v38  ;;  %1894 = vmatpush3.bf16.msra.mxu0 %v677_v39 }
 0x2b2   : > { %1905 = vmatprep.subr.bf16.mxu0 %v2293_v0  ;;  %2095 = vpow2.f32 %v657_v37 }
 0x2b4   : > { %v771_v57 = vpop.permute.xlu0 %770 }
 0x2bb   : > { %v2094_v40 = vpop.eup %2093 }
 0x2bc   : > { %v664_v41 = vsel %vm556_vm2, %v2094_v40, 0.0  ;;  %v2096_v42 = vpop.eup %2095 }
 0x2bd   : > { %665 = vadd.xlane.f32.xlu1 %v664_v41  ;;  %v661_v43 = vsel %vm556_vm2, %v2096_v42, 0.0 }
 0x2c1   : > { %662 = vadd.xlane.f32.xlu1 %v661_v43 }
 0x2d2   : > { %823 = vrot.lane.b32.xlu1 %v2497_v15, %s2296_s25 }
 0x2d6   : > { %821 = vrot.lane.b32.xlu1 %v2511_v20, %s2296_s25  ;;  %s2191_s25 = scalar_lea.vmem %s2190_s22, 2048 }
 0x2d7   : > { %p2193_p8 = scmp.lt.s32.totalorder %s2191_s25, %s2185_s16 }
 0x2d9   : > { %p2194_p11 = por %p2193_p8, %p2192_p7 }
 0x2db   : > { %p2195_p13 = pnand %p2194_p11, %p2188_p4 }
 0x34a   : > { %v666_v45 = vpop.xlane.xlu1 %665 }
 0x34b   : > { %2097 = vrcp.f32 %v666_v45 }
 0x34e   : > { %v663_v46 = vpop.xlane.xlu1 %662 }
 0x34f   : > { %2099 = vrcp.f32 %v663_v46 }
 0x352   : > { %v824_v49 = vpop.permute.xlu1 %823 }
 0x353   : > { %v829_v53 = vsel %vm556_vm2, %v824_v49, 0 }
 0x355   : > { %v2098_v47 = vpop.eup %2097 }
 0x356   : > { %v670_v48 = vmul.f32 %v2098_v47, %v2094_v40  ;;  %v822_v56 = vpop.permute.xlu1 %821 }
 0x358   : > { %672 = vst.msk [vmem:[%s2541_s15 + $0x20] sm:$0xff] %vm556_vm2, %v670_v48  ;;  %v674_v50 = vpack.c.bf16 %v670_v48, %v670_v48 }
 0x359   : > { %v2100_v51 = vpop.eup %2099 }
 0x35a   : > { %v669_v52 = vmul.f32 %v2100_v51, %v2096_v42  ;;  %1902 = vmatmul.mubr.msk.bf16.vlgmr.msra.gmra.mrb[12].mxu1 %vm556_vm2, %v674_v50 }
 0x35b   : > { %1912 = vmatpush3.bf16.xpose.msra.mxu1 %v829_v53  ;;  %1913 = vmatprep.mubr.msk.bf16.mxu1 %vm2294_vm0, %v2293_v0 }
 0x35c   : > { %671 = vst.msk [vmem:[%s2541_s15] sm:$0xff] %vm556_vm2, %v669_v52  ;;  %v673_v54 = vpack.c.bf16 %v669_v52, %v669_v52  ;;  %1923 = vmatprep.subr.bf16.mxu1 %v2293_v0 }
 0x35e   : > { %1896 = vmatmul.mubr.msk.bf16.vlgmr.msra.gmra.mrb[4].mxu0 %vm556_vm2, %v673_v54 }
 0x35f   : > { %1906 = vmatpush3.bf16.xpose.msra.mxu0 %v778_v55  ;;  %1907 = vmatprep.mubr.msk.bf16.mxu0 %vm2294_vm0, %v2293_v0 }
 0x360   : > { %1917 = vmatprep.subr.bf16.mxu0 %v2293_v0 }
 0x362   : > { %1914 = vmatmul.mubr.msk.bf16.vlgmr.msra.gmra.mrb[16].mxu1 %vm556_vm2, %v822_v56 }
 0x363   : > { %1925 = vmatprep.mubr.msk.bf16.mxu1 %vm2294_vm0, %v2293_v0 }
 0x366   : > { %1908 = vmatmul.mubr.msk.bf16.vlgmr.msra.gmra.mrb[8].mxu0 %vm556_vm2, %v771_v57 }
 0x367   : > { %1919 = vmatprep.mubr.msk.bf16.mxu0 %vm2294_vm0, %v2293_v0 }
 0x42d   : > { %v2563_v58 = vpop.f32.mrb[12].mxu1 }
 0x42e   : > { %v1903_v59 = vpop.f32.mrb[13].mxu1 }
 0x42f   : > { %v766_v60 = vpop.f32.mrb[14].mxu1 }
 0x430   : > { %v1904_v61 = vpop.f32.mrb[15].mxu1 }
 0x431   : > { %v2565_v62 = vpop.f32.mrb[4].mxu0 }
 0x432   : > { %v1897_v63 = vpop.f32.mrb[5].mxu0 }
 0x433   : > { %v719_v1 = vpop.f32.mrb[6].mxu0 }
 0x434   : > { %v1898_v2 = vpop.f32.mrb[7].mxu0 }
 0x435   : > { %v865_v3 = vpop.f32.mrb[16].mxu1 }
 0x436   : > { %v1915_v4 = vpop.f32.mrb[17].mxu1  ;;  %v874_v5 = vsel %vm556_vm2, %v865_v3, -inf }
 0x437   : > { %875 = vmax.xlane.f32.xlu1 %v874_v5  ;;  %v868_v6 = vpop.f32.mrb[18].mxu1 }
 0x438   : > { %v1916_v7 = vpop.f32.mrb[19].mxu1 }
 0x439   : > { %v814_v8 = vpop.f32.mrb[8].mxu0 }
 0x43a   : > { %v1909_v9 = vpop.f32.mrb[9].mxu0  ;;  %v871_v10 = vsel %vm556_vm2, %v814_v8, -inf }
 0x43b   : > { %872 = vmax.xlane.f32.xlu0 %v871_v10  ;;  %v817_v11 = vpop.f32.mrb[10].mxu0 }
 0x43c   : > { %v1910_v12 = vpop.f32.mrb[11].mxu0 }
 0x448   : > { %944 = vrot.lane.b32.xlu1 %v2497_v15, %s2297_s18 }
 0x44c   : > { %992 = vrot.lane.b32.xlu1 %v2499_v17, %s2298_s21 }
 0x450   : > { %1042 = vrot.lane.b32.xlu1 %v2497_v15, %s2298_s21 }
 0x454   : > { %1040 = vrot.lane.b32.xlu1 %v2511_v20, %s2298_s21 }
 0x4c4   : > { %v876_v13 = vpop.xlane.xlu1 %875 }
 0x4c5   : > { %v878_v14 = vsub.f32 %v865_v3, %v876_v13 }
 0x4c7   : > { %v881_v16 = vmul.f32 1.442695, %v878_v14 }
 0x4c8   : > { %v945_v18 = vpop.permute.xlu1 %944  ;;  %v873_v19 = vpop.xlane.xlu0 %872 }
 0x4c9   : > { %2101 = vpow2.f32 %v881_v16  ;;  %v877_v22 = vsub.f32 %v814_v8, %v873_v19  ;;  %1924 = vmatpush3.bf16.msra.mxu1 %v945_v18 }
 0x4ca   : > { %1935 = vmatprep.subr.bf16.mxu1 %v2293_v0 }
 0x4cb   : > { %v879_v23 = vmul.f32 1.442695, %v877_v22 }
 0x4cc   : > { %v993_v30 = vpop.permute.xlu1 %992 }
 0x4cd   : > { %2103 = vpow2.f32 %v879_v23  ;;  %v998_v40 = vsel %vm556_vm2, %v993_v30, 0 }
 0x4d0   : > { %v1043_v34 = vpop.permute.xlu1 %1042 }
 0x4d1   : > { %v1048_v37 = vsel %vm556_vm2, %v1043_v34, 0 }
 0x4d3   : > { %v2102_v24 = vpop.eup %2101 }
 0x4d4   : > { %v886_v25 = vsel %vm556_vm2, %v2102_v24, 0.0  ;;  %v1041_v41 = vpop.permute.xlu1 %1040 }
 0x4d5   : > { %887 = vadd.xlane.f32.xlu0 %v886_v25 }
 0x4d7   : > { %v2104_v26 = vpop.eup %2103 }
 0x4d8   : > { %v883_v27 = vsel %vm556_vm2, %v2104_v26, 0.0 }
 0x4d9   : > { %884 = vadd.xlane.f32.xlu0 %v883_v27 }
 0x4ef   : > { %898 = vrot.lane.b32.xlu0 %v2499_v17, %s2297_s18 }
 0x4f3   : > { %990 = vrot.lane.b32.xlu0 %v2513_v21, %s2298_s21 }
 0x562   : > { %v888_v28 = vpop.xlane.xlu0 %887 }
 0x563   : > { %2105 = vrcp.f32 %v888_v28 }
 0x566   : > { %v885_v29 = vpop.xlane.xlu0 %884 }
 0x567   : > { %2107 = vrcp.f32 %v885_v29 }
 0x56a   : > { %v899_v31 = vpop.permute.xlu0 %898 }
 0x56b   : > { %1918 = vmatpush3.bf16.msra.mxu0 %v899_v31 }
 0x56c   : > { %1929 = vmatprep.subr.bf16.mxu0 %v2293_v0 }
 0x56d   : > { %v2106_v32 = vpop.eup %2105 }
 0x56e   : > { %v892_v33 = vmul.f32 %v2106_v32, %v2102_v24  ;;  %v991_v42 = vpop.permute.xlu0 %990 }
 0x570   : > { %1786 = vst.msk [vmem:[%s2541_s15 + $0x28] sm:$0xff] %vm556_vm2, %v892_v33  ;;  %v897_v35 = vpack.c.bf16 %v892_v33, %v892_v33 }
 0x571   : > { %v2108_v36 = vpop.eup %2107 }
 0x572   : > { %v891_v38 = vmul.f32 %v2108_v36, %v2104_v26  ;;  %1926 = vmatmul.mubr.msk.bf16.vlgmr.msra.gmra.mrb[20].mxu1 %vm556_vm2, %v897_v35 }
 0x573   : > { %1936 = vmatpush3.bf16.xpose.msra.mxu1 %v1048_v37  ;;  %1937 = vmatprep.mubr.msk.bf16.mxu1 %vm2294_vm0, %v2293_v0 }
 0x574   : > { %1785 = vst.msk [vmem:[%s2541_s15 + $0x8] sm:$0xff] %vm556_vm2, %v891_v38  ;;  %v896_v39 = vpack.c.bf16 %v891_v38, %v891_v38  ;;  %1947 = vmatprep.subr.bf16.mxu1 %v2293_v0 }
 0x576   : > { %1920 = vmatmul.mubr.msk.bf16.vlgmr.msra.gmra.mrb[12].mxu0 %vm556_vm2, %v896_v39 }
 0x577   : > { %1930 = vmatpush3.bf16.xpose.msra.mxu0 %v998_v40  ;;  %1931 = vmatprep.mubr.msk.bf16.mxu0 %vm2294_vm0, %v2293_v0 }
 0x578   : > { %1941 = vmatprep.subr.bf16.mxu0 %v2293_v0 }
 0x57a   : > { %1938 = vmatmul.mubr.msk.bf16.vlgmr.msra.gmra.mrb[24].mxu1 %vm556_vm2, %v1041_v41 }
 0x57b   : > { %1949 = vmatprep.mubr.msk.bf16.mxu1 %vm2294_vm0, %v2293_v0 }
 0x57e   : > { %1932 = vmatmul.mubr.msk.bf16.vlgmr.msra.gmra.mrb[16].mxu0 %vm556_vm2, %v991_v42 }
 0x57f   : > { %1943 = vmatprep.mubr.msk.bf16.mxu0 %vm2294_vm0, %v2293_v0 }
 0x645   : > { %v2601_v43 = vpop.f32.mrb[20].mxu1 }
 0x646   : > { %v1927_v44 = vpop.f32.mrb[21].mxu1 }
 0x647   : > { %v987_v45 = vpop.f32.mrb[22].mxu1 }
 0x648   : > { %v1928_v46 = vpop.f32.mrb[23].mxu1 }
 0x649   : > { %v2603_v47 = vpop.f32.mrb[12].mxu0 }
 0x64a   : > { %v2067_v48 = vpack.i.bf16 %v2601_v43, %v2603_v47  ;;  %v1921_v49 = vpop.f32.mrb[13].mxu0 }
 0x64b   : > { %v941_v50 = vpop.f32.mrb[14].mxu0 }
 0x64c   : > { %v1922_v51 = vpop.f32.mrb[15].mxu0 }
 0x64d   : > { %v1084_v52 = vpop.f32.mrb[24].mxu1 }
 0x64e   : > { %v1939_v53 = vpop.f32.mrb[25].mxu1  ;;  %v1093_v54 = vsel %vm556_vm2, %v1084_v52, -inf }
 0x64f   : > { %1094 = vmax.xlane.f32.xlu1 %v1093_v54  ;;  %v1087_v55 = vpop.f32.mrb[26].mxu1 }
 0x650   : > { %v1940_v56 = vpop.f32.mrb[27].mxu1 }
 0x651   : > { %v1034_v57 = vpop.f32.mrb[16].mxu0 }
 0x652   : > { %v1933_v59 = vpop.f32.mrb[17].mxu0  ;;  %v1090_v60 = vsel %vm556_vm2, %v1034_v57, -inf }
 0x653   : > { %1091 = vmax.xlane.f32.xlu0 %v1090_v60  ;;  %v1037_v61 = vpop.f32.mrb[18].mxu0 }
 0x654   : > { %v1934_v63 = vpop.f32.mrb[19].mxu0 }
 0x660   : > { %1163 = vrot.lane.b32.xlu1 %v2497_v15, %s2299_s24 }
 0x664   : > { %1211 = vrot.lane.b32.xlu1 %v2499_v17, %s2300_s26 }
 0x668   : > { %1261 = vrot.lane.b32.xlu1 %v2497_v15, %s2300_s26 }
 0x66c   : > { %1259 = vrot.lane.b32.xlu1 %v2511_v20, %s2300_s26 }
 0x6dc   : > { %v1095_v1 = vpop.xlane.xlu1 %1094 }
 0x6dd   : > { %v1097_v2 = vsub.f32 %v1084_v52, %v1095_v1 }
 0x6df   : > { %v1100_v3 = vmul.f32 1.442695, %v1097_v2 }
 0x6e0   : > { %v1164_v4 = vpop.permute.xlu1 %1163  ;;  %v1092_v5 = vpop.xlane.xlu0 %1091 }
 0x6e1   : > { %2109 = vpow2.f32 %v1100_v3  ;;  %v1096_v6 = vsub.f32 %v1034_v57, %v1092_v5  ;;  %1948 = vmatpush3.bf16.msra.mxu1 %v1164_v4  ;;  %v2089_v5 = vld [vmem:[%s2791_s4] sm:$0xff]  }
 0x6e2   : > { %1959 = vmatprep.subr.bf16.mxu1 %v2293_v0 }
 0x6e3   : > { %v1098_v7 = vmul.f32 1.442695, %v1096_v6  ;;  %v2090_v6 = vld [vmem:[%s2791_s4 + $0x8] sm:$0xff]  }
 0x6e4   : > { %v1212_v13 = vpop.permute.xlu1 %1211 }
 0x6e5   : > { %2111 = vpow2.f32 %v1098_v7  ;;  %v1217_v26 = vsel %vm556_vm2, %v1212_v13, 0  ;;  %v2091_v7 = vld [vmem:[%s2791_s4 + $0x10] sm:$0xff]  }
 0x6e8   : > { %v1262_v19 = vpop.permute.xlu1 %1261 }
 0x6e9   : > { %v1267_v24 = vsel %vm556_vm2, %v1262_v19, 0 }
 0x6eb   : > { %v2110_v8 = vpop.eup %2109 }
 0x6ec   : > { %v1105_v9 = vsel %vm556_vm2, %v2110_v8, 0.0  ;;  %v1260_v27 = vpop.permute.xlu1 %1259 }
 0x6ed   : > { %1106 = vadd.xlane.f32.xlu0 %v1105_v9 }
 0x6ef   : > { %v2112_v10 = vpop.eup %2111 }
 0x6f0   : > { %v1102_v20 = vsel %vm556_vm2, %v2112_v10, 0.0 }
 0x6f1   : > { %1103 = vadd.xlane.f32.xlu0 %v1102_v20 }
 0x707   : > { %1117 = vrot.lane.b32.xlu0 %v2499_v17, %s2299_s24 }
 0x70b   : > { %1209 = vrot.lane.b32.xlu0 %v2513_v21, %s2300_s26 }
 0x77a   : > { %v1107_v11 = vpop.xlane.xlu0 %1106 }
 0x77b   : > { %2113 = vrcp.f32 %v1107_v11 }
 0x77e   : > { %v1104_v12 = vpop.xlane.xlu0 %1103 }
 0x77f   : > { %2115 = vrcp.f32 %v1104_v12 }
 0x782   : > { %v1118_v14 = vpop.permute.xlu0 %1117 }
 0x783   : > { %1942 = vmatpush3.bf16.msra.mxu0 %v1118_v14 }
 0x784   : > { %1953 = vmatprep.subr.bf16.mxu0 %v2293_v0 }
 0x785   : > { %v2114_v16 = vpop.eup %2113 }
 0x786   : > { %v1111_v18 = vmul.f32 %v2114_v16, %v2110_v8  ;;  %v1210_v28 = vpop.permute.xlu0 %1209  ;;  %v2092_v8 = vld [vmem:[%s2791_s4 + $0x18] sm:$0xff]  }
 0x788   : > { %1792 = vst.msk [vmem:[%s2541_s15 + $0x30] sm:$0xff] %vm556_vm2, %v1111_v18  ;;  %v1116_v22 = vpack.c.bf16 %v1111_v18, %v1111_v18 }
 0x789   : > { %v2116_v23 = vpop.eup %2115 }
 0x78a   : > { %v1110_v21 = vmul.f32 %v2116_v23, %v2112_v10  ;;  %1950 = vmatmul.mubr.msk.bf16.vlgmr.msra.gmra.mrb[28].mxu1 %vm556_vm2, %v1116_v22 }
 0x78b   : > { %1960 = vmatpush3.bf16.xpose.msra.mxu1 %v1267_v24  ;;  %1961 = vmatprep.mubr.msk.bf16.mxu1 %vm2294_vm0, %v2293_v0 }
 0x78c   : > { %1791 = vst.msk [vmem:[%s2541_s15 + $0x10] sm:$0xff] %vm556_vm2, %v1110_v21  ;;  %v1115_v25 = vpack.c.bf16 %v1110_v21, %v1110_v21  ;;  %1971 = vmatprep.subr.bf16.mxu1 %v2293_v0 }
 0x78e   : > { %1944 = vmatmul.mubr.msk.bf16.vlgmr.msra.gmra.mrb[20].mxu0 %vm556_vm2, %v1115_v25 }
 0x78f   : > { %1954 = vmatpush3.bf16.xpose.msra.mxu0 %v1217_v26  ;;  %1955 = vmatprep.mubr.msk.bf16.mxu0 %vm2294_vm0, %v2293_v0 }
 0x790   : > { %1965 = vmatprep.subr.bf16.mxu0 %v2293_v0 }
 0x792   : > { %1962 = vmatmul.mubr.msk.bf16.vlgmr.msra.gmra.mrb[32].mxu1 %vm556_vm2, %v1260_v27 }
 0x793   : > { %1973 = vmatprep.mubr.msk.bf16.mxu1 %vm2294_vm0, %v2293_v0 }
 0x796   : > { %1956 = vmatmul.mubr.msk.bf16.vlgmr.msra.gmra.mrb[24].mxu0 %vm556_vm2, %v1210_v28 }
 0x797   : > { %1967 = vmatprep.mubr.msk.bf16.mxu0 %vm2294_vm0, %v2293_v0 }
 0x85d   : > { %v1203_v29 = vpop.f32.mrb[28].mxu1 }
 0x85e   : > { %v1951_v30 = vpop.f32.mrb[29].mxu1 }
 0x85f   : > { %v1206_v31 = vpop.f32.mrb[30].mxu1 }
 0x860   : > { %v1952_v32 = vpop.f32.mrb[31].mxu1 }
 0x861   : > { %v1157_v33 = vpop.f32.mrb[20].mxu0 }
 0x862   : > { %v2072_v34 = vpack.i.bf16 %v1203_v29, %v1157_v33  ;;  %v1945_v35 = vpop.f32.mrb[21].mxu0 }
 0x863   : > { %v1160_v36 = vpop.f32.mrb[22].mxu0  ;;  %v1801_v35 = vld [vmem:[%s2792_s5] ss:$0 sm:$0xff] }
 0x864   : > { %v1946_v37 = vpop.f32.mrb[23].mxu0 }
 0x865   : > { %v1303_v38 = vpop.f32.mrb[32].mxu1 }
 0x866   : > { %v1963_v39 = vpop.f32.mrb[33].mxu1  ;;  %v1312_v40 = vsel %vm556_vm2, %v1303_v38, -inf }
 0x867   : > { %1313 = vmax.xlane.f32.xlu1 %v1312_v40  ;;  %v1306_v41 = vpop.f32.mrb[34].mxu1 }
 0x868   : > { %v1964_v42 = vpop.f32.mrb[35].mxu1 }
 0x869   : > { %v1253_v44 = vpop.f32.mrb[24].mxu0 }
 0x86a   : > { %v1957_v45 = vpop.f32.mrb[25].mxu0  ;;  %v1309_v46 = vsel %vm556_vm2, %v1253_v44, -inf }
 0x86b   : > { %1310 = vmax.xlane.f32.xlu0 %v1309_v46  ;;  %v1256_v49 = vpop.f32.mrb[26].mxu0 }
 0x86c   : > { %v1958_v50 = vpop.f32.mrb[27].mxu0 }
 0x878   : > { %1382 = vrot.lane.b32.xlu1 %v2497_v15, %s2301_s27 }
 0x87c   : > { %2068 = vrot.lane.b32.xlu1 %v2067_v48, %s2301_s27 }
 0x880   : > { %2073 = vrot.lane.b32.xlu1 %v2072_v34, %s2299_s24  ;;  %s1820_s24 = sshll.u32 %s2377_s13, 10 }
 0x881   : > { %s2694_s28 = scalar_lea.hbm %s2796_s9, %s1820_s24 }
 0x8f4   : > { %v1314_v51 = vpop.xlane.xlu1 %1313 }
 0x8f5   : > { %v1316_v52 = vsub.f32 %v1303_v38, %v1314_v51 }
 0x8f7   : > { %v1319_v53 = vmul.f32 1.442695, %v1316_v52 }
 0x8f8   : > { %v1383_v54 = vpop.permute.xlu1 %1382  ;;  %v1311_v55 = vpop.xlane.xlu0 %1310 }
 0x8f9   : > { %2117 = vpow2.f32 %v1319_v53  ;;  %v1315_v56 = vsub.f32 %v1253_v44, %v1311_v55  ;;  %1972 = vmatpush3.bf16.msra.mxu1 %v1383_v54 }
 0x8fb   : > { %v1317_v57 = vmul.f32 1.442695, %v1315_v56 }
 0x8fc   : > { %v2069_v19 = vpop.permute.xlu1 %2068 }
 0x8fd   : > { %2119 = vpow2.f32 %v1317_v57  ;;  %v2071_v23 = vunpack.i.h.bf16 %v2069_v19 }
 0x8ff   : > { %v1453_v26 = vsel %vm556_vm2, %v2563_v58, %v2071_v23 }
 0x900   : > { %v2074_v22 = vpop.permute.xlu1 %2073 }
 0x901   : > { %v2076_v24 = vunpack.i.h.bf16 %v2074_v22  ;;  %v2075_v21 = vunpack.i.l.bf16 %v2074_v22 }
 0x903   : > { %v2118_v59 = vpop.eup %2117  ;;  %v1455_v30 = vsel %vm422_vm1, %v1453_v26, %v2076_v24 }
 0x904   : > { %v1324_v15 = vsel %vm556_vm2, %v2118_v59, 0.0 }
 0x905   : > { %1325 = vadd.xlane.f32.xlu0 %v1324_v15 }
 0x907   : > { %v2120_v60 = vpop.eup %2119 }
 0x908   : > { %v1321_v43 = vsel %vm556_vm2, %v2120_v60, 0.0 }
 0x909   : > { %1322 = vadd.xlane.f32.xlu0 %v1321_v43 }
 0x91f   : > { %1336 = vrot.lane.b32.xlu0 %v2499_v17, %s2301_s27 }
 0x992   : > { %v1326_v47 = vpop.xlane.xlu0 %1325 }
 0x993   : > { %2121 = vrcp.f32 %v1326_v47 }
 0x996   : > { %v1323_v48 = vpop.xlane.xlu0 %1322 }
 0x997   : > { %2123 = vrcp.f32 %v1323_v48 }
 0x99a   : > { %v1337_v61 = vpop.permute.xlu0 %1336 }
 0x99b   : > { %1966 = vmatpush3.bf16.msra.mxu0 %v1337_v61 }
 0x99c   : > { %1977 = vmatprep.subr.bf16.mxu0 %v2293_v0 }
 0x99d   : > { %v2122_v63 = vpop.eup %2121 }
 0x99e   : > { %v1330_v1 = vmul.f32 %v2122_v63, %v2118_v59 }
 0x9a0   : > { %1798 = vst.msk [vmem:[%s2541_s15 + $0x38] sm:$0xff] %vm556_vm2, %v1330_v1  ;;  %v1335_v2 = vpack.c.bf16 %v1330_v1, %v1330_v1 }
 0x9a1   : > { %v2124_v3 = vpop.eup %2123 }
 0x9a2   : > { %v1329_v4 = vmul.f32 %v2124_v3, %v2120_v60  ;;  %1974 = vmatmul.mubr.msk.bf16.vlgmr.msra.gmra.mrb[36].mxu1 %vm556_vm2, %v1335_v2 }
 0x9a4   : > { %1797 = vst.msk [vmem:[%s2541_s15 + $0x18] sm:$0xff] %vm556_vm2, %v1329_v4  ;;  %v1334_v17 = vpack.c.bf16 %v1329_v4, %v1329_v4 }
 0x9a6   : > { %1968 = vmatmul.mubr.msk.bf16.vlgmr.msra.gmra.mrb[28].mxu0 %vm556_vm2, %v1334_v17 }
 0x9a7   : > { %1985 = vmatprep.mubr.msk.bf16.mxu0 %vm2294_vm0, %v2293_v0  ;;  %1978 = vmatpush3.bf16.msra.mxu0 %v2089_v5 }
 0x9a8   : > { %1979 = vmatprep.subr.bf16.mxu0 %v2293_v0 }
 0x9ab   : > { %1980 = vmatpush3.bf16.msra.mxu0 %v2090_v6 }
 0x9ac   : > { %1981 = vmatprep.subr.bf16.mxu0 %v2293_v0 }
 0x9af   : > { %1982 = vmatpush3.bf16.msra.mxu0 %v2091_v7 }
 0x9b0   : > { %1983 = vmatprep.subr.bf16.mxu0 %v2293_v0  ;;  %v2070_v0 = vunpack.i.l.bf16 %v2069_v19 }
 0x9b2   : > { %v1452_v27 = vsel %vm556_vm2, %v2565_v62, %v2070_v0 }
 0x9b3   : > { %1984 = vmatpush3.bf16.msra.mxu0 %v2092_v8  ;;  %v1454_v31 = vsel %vm422_vm1, %v1452_v27, %v2075_v21 }
 0xa75   : > { %v1422_v9 = vpop.f32.mrb[36].mxu1 }
 0xa76   : > { %v1975_v10 = vpop.f32.mrb[37].mxu1 }
 0xa77   : > { %v1425_v20 = vpop.f32.mrb[38].mxu1 }
 0xa78   : > { %v1976_v11 = vpop.f32.mrb[39].mxu1 }
 0xa79   : > { %v1376_v12 = vpop.f32.mrb[28].mxu0 }
 0xa7a   : > { %v2077_v13 = vpack.i.bf16 %v1422_v9, %v1376_v12  ;;  %v1969_v14 = vpop.f32.mrb[29].mxu0 }
 0xa7b   : > { %v1379_v16 = vpop.f32.mrb[30].mxu0 }
 0xa7c   : > { %2078 = vrot.lane.b32.xlu0 %v2077_v13, %s2297_s18  ;;  %v1970_v18 = vpop.f32.mrb[31].mxu0 }
 0xaee   : > { %v2079_v25 = vpop.permute.xlu0 %2078 }
 0xaef   : > { %v2081_v28 = vunpack.i.h.bf16 %v2079_v25  ;;  %v2080_v29 = vunpack.i.l.bf16 %v2079_v25 }
 0xaf1   : > { %v1458_v32 = vsel %vm1456_vm3, %v1455_v30, %v2081_v28  ;;  %v1457_v33 = vsel %vm1456_vm3, %v1454_v31, %v2080_v29 }
 0xaf2   : > { %v1459_v34 = vpack.c.bf16 %v1458_v32, %v1457_v33 }
 0xaf4   : > { %1986 = vmatmul.mubr.msk.bf16.vlgmr.msra.gmra.mrb[32].mxu0 %vm1499_vm4, %v1459_v34 }
 0xbc7   : > { %v1537_v58 = vpop.f32.mrb[32].mxu0 }
 0xbc8   : > { %v1538_v36 = vadd.f32 %v1801_v35, %v1537_v58  ;;  %v1987_v37 = vpop.f32.mrb[33].mxu0 }
 0xbc9   : > { %v1540_v62 = vpop.f32.mrb[34].mxu0 }
 0xbca   : > { %v1541_v38 = vadd.f32 %v1801_v35, %v1540_v62  ;;  %v1988_v39 = vpop.f32.mrb[35].mxu0  ;;  %v1544_v40 = vsel %vm1499_vm4, %v1538_v36, 0.0 }
 0xbcb   : > { %1545 = vadd.xlane.f32.xlu1 %v1544_v40 }
 0xbcc   : > { %v1547_v41 = vsel %vm1499_vm4, %v1541_v38, 0.0 }
 0xbcd   : > { %1548 = vadd.xlane.f32.xlu0 %v1547_v41 }
 0xc58   : > { %v1546_v42 = vpop.xlane.xlu1 %1545 }
 0xc59   : > { %v1551_v44 = vmul.f32 0.015625, %v1546_v42 }
 0xc5a   : > { %v1549_v45 = vpop.xlane.xlu0 %1548 }
 0xc5b   : > { %v1553_v46 = vsub.f32 %v1538_v36, %v1551_v44  ;;  %v1552_v49 = vmul.f32 0.015625, %v1549_v45 }
 0xc5d   : > { %v1554_v50 = vsub.f32 %v1541_v38, %v1552_v49  ;;  %v1555_v51 = vmul.f32 %v1553_v46, %v1553_v46 }
 0xc5f   : > { %v1557_v52 = vsel %vm1499_vm4, %v1555_v51, 0.0  ;;  %v1556_v53 = vmul.f32 %v1554_v50, %v1554_v50 }
 0xc60   : > { %1558 = vadd.xlane.f32.xlu0 %v1557_v52 }
 0xc61   : > { %v1560_v54 = vsel %vm1499_vm4, %v1556_v53, 0.0 }
 0xc64   : > { %1561 = vadd.xlane.f32.xlu0 %v1560_v54 }
 0xc65   : > { %2198 = shalt.err (!%p2195_p13)
}
 0xc66   : > { %s2199_s15 = scalar_lea.hbm %s2694_s28, 1024  ;;  %s2203_s21 = scalar_lea.hbm %s2796_s9, 2048 }
 0xc67   : > { %p2200_p5 = scmp.ne.s32.totalorder %s2694_s28, %s2199_s15  ;;  %p2204_p9 = scmp.lt.u32.totalorder %s2694_s28, %s2796_s9 }
 0xc68   : > { %p2205_p12 = scmp.lt.u32.totalorder %s2203_s21, %s2199_s15  ;;  %p2207_p1 = scmp.lt.u32.totalorder %s2199_s15, %s2694_s28 }
 0xc69   : > { %p2201_p0 = pnand %p2200_p5, %p2815_p2 }
 0xc6a   : > { %p2206_p10 = por %p2205_p12, %p2204_p9 }
 0xc6b   : > { %p2202_p6 = pneg %p2201_p0 }
 0xc6c   : > { %p2208_p3 = por %p2207_p1, %p2206_p10 }
 0xc6e   : > { %p2209_p4 = pnand %p2208_p3, %p2202_p6 }
 0xc70   : > { %2212 = shalt.err (!%p2209_p4)
}
 0xc71   : > { %s2303_s27 = smov 128   ;;  %s2304_s16 = smov 8   ;;  %v1807_v47 = vld [vmem:[%s2793_s6] ss:$0 sm:$0xff] }
 0xc72   : > { %1998 = dma.vmem_to_hbm [thread:$0]  (%p2815_p2), %s2697_s29, 1024, %s2694_s28, %s1597_s14, %s2303_s27, %s2303_s27, %s2304_s16  }
 0xc73   : > { %s1763_s25 = sshll.u32 %s2538_s23, 4  ;;  %v1808_v61 = vld [vmem:[%s2794_s7] ss:$0 sm:$0xff]  ;;  %s1818_s28 = sshll.u32 %s2377_s13, 8 }
 0xc74   : > { %s376_s29 = scalar_lea.vmem [#allocation7], %s1763_s25  ;;  %s2738_s24 = scalar_lea.hbm %s2795_s8, %s1818_s28 }
 0xc75   : > { %s1610_s14 = sshll.u32 %s376_s29, 4  ;;  %s1592_s26 = scalar_lea.sflag [#allocation4], %s2538_s23  ;;  %s2740_s14 = int_to_ptr.vmem [resolvable:$true] %s1610_s14 }
 0xc76   : > { %s2213_s13 = scalar_lea.vmem %s2740_s14, 256  ;;  %s2305_s17 = smov [#allocation7]  }
 0xc77   : > { %p2214_p7 = scmp.ne.s32.totalorder %s2740_s14, %s2213_s13  ;;  %s2217_s22 = sshll.u32 %s2305_s17, 4  ;;  %s2218_s22 = int_to_ptr.vmem [resolvable:$false] %s2217_s22 }
 0xc78   : > { %s2219_s25 = scalar_lea.vmem %s2218_s22, 512  ;;  %p2220_p13 = scmp.lt.s32.totalorder %s2740_s14, %s2218_s22 }
 0xc79   : > { %p2215_p8 = pnand %p2214_p7, %p2815_p2  ;;  %p2221_p5 = scmp.lt.s32.totalorder %s2219_s25, %s2213_s13 }
 0xc7b   : > { %p2216_p11 = pneg %p2215_p8  ;;  %p2222_p0 = por %p2221_p5, %p2220_p13 }
 0xc7d   : > { %p2223_p6 = pnand %p2222_p0, %p2216_p11 }
 0xced   : > { %v1559_v55 = vpop.xlane.xlu0 %1558 }
 0xcee   : > { %v1563_v56 = vmul.f32 0.015625, %v1559_v55 }
 0xcf0   : > { %v1565_v57 = vadd.f32 1e-05, %v1563_v56 }
 0xcf1   : > { %v1562_v59 = vpop.xlane.xlu0 %1561 }
 0xcf2   : > { %2125 = vrsqrt.f32 %v1565_v57  ;;  %v1564_v15 = vmul.f32 0.015625, %v1562_v59 }
 0xcf4   : > { %v1566_v60 = vadd.f32 1e-05, %v1564_v15 }
 0xcf6   : > { %2127 = vrsqrt.f32 %v1566_v60 }
 0xcfc   : > { %v2126_v43 = vpop.eup %2125 }
 0xcfd   : > { %v1569_v48 = vmul.f32 %v2126_v43, %v1553_v46 }
 0xcff   : > { %v1578_v63 = vmul.f32 %v1807_v47, %v1569_v48 }
 0xd00   : > { %v2128_v1 = vpop.eup %2127 }
 0xd01   : > { %v1587_v2 = vadd.f32 %v1808_v61, %v1578_v63  ;;  %v1570_v3 = vmul.f32 %v2128_v1, %v1554_v50 }
 0xd03   : > { %v1579_v4 = vmul.f32 %v1807_v47, %v1570_v3  ;;  %1589 = vst.msk [vmem:[%s376_s29] sm:$0xff] %vm1499_vm4, %v1587_v2 }
 0xd05   : > { %v1588_v17 = vadd.f32 %v1808_v61, %v1579_v4 }
 0xd07   : > { %1590 = vst.msk [vmem:[%s376_s29 + $0x8] sm:$0xff] %vm1499_vm4, %v1588_v17 }
 0xd08   : > { %2226 = shalt.err (!%p2223_p6)
}
 0xd09   : > { %s2227_s15 = scalar_lea.hbm %s2738_s24, 256  ;;  %s2231_s29 = scalar_lea.hbm %s2795_s8, 512 }
 0xd0a   : > { %p2228_p9 = scmp.ne.s32.totalorder %s2738_s24, %s2227_s15  ;;  %p2232_p1 = scmp.lt.u32.totalorder %s2738_s24, %s2795_s8 }
 0xd0b   : > { %p2233_p3 = scmp.lt.u32.totalorder %s2231_s29, %s2227_s15  ;;  %p2235_p7 = scmp.lt.u32.totalorder %s2227_s15, %s2738_s24 }
 0xd0c   : > { %p2229_p12 = pnand %p2228_p9, %p2815_p2 }
 0xd0d   : > { %p2234_p4 = por %p2233_p3, %p2232_p1 }
 0xd0e   : > { %p2230_p10 = pneg %p2229_p12 }
 0xd0f   : > { %p2236_p8 = por %p2235_p7, %p2234_p4 }
 0xd11   : > { %p2237_p11 = pnand %p2236_p8, %p2230_p10 }
 0xd13   : > { %2240 = shalt.err (!%p2237_p11)
}
 0xd14   : > { %1997 = dma.vmem_to_hbm [thread:$0]  (%p2815_p2), %s2740_s14, 256, %s2738_s24, %s1592_s26, %s2303_s27, %s2303_s27, %s2304_s16  }
 0xd15 PF: > { %p2019_p13 = scmp.ge.s32.totalorder %s2287_s12, 2  ;;  %s1642_s13 = sand.u32 1, %s2275_s30  }
 0xd16   : > { %p2816_p5 = scmp.ne.s32.totalorder %s2807_s20, 0  ;;  %s1643_s17 = scalar_lea.sflag [#allocation4], %s1642_s13 }
 0xd18   : > { %p2009_p0 = pnand %p2019_p13, %p2816_p5 }
 0xd1a   : > { %2266 = dma.done.wait (!%p2009_p0), %s1643_s17, 256  }
 0xd1b   : > { %2268 = vsyncadd (!%p2009_p0), %s1643_s17, 4294967040  ;;  %s1652_s19 = scalar_lea.sflag [#allocation9], %s1642_s13 }
 0xd1c   : > { %2270 = dma.done.wait (!%p2009_p0), %s1652_s19, 1024  }
 0xd1d   : > { %2272 = vsyncadd (!%p2009_p0), %s1652_s19, 4294966272  ;;  %s2817_s12 = sld [smem:[#allocation15_spill]]  ;;  %s2818_s23 = sld [smem:[#allocation14_spill]] }
 0xd1e   : > { %s2819_s11 = sld [smem:[#allocation16_spill]]  ;;  %s2820_s30 = smov %s2279_s10 }
 0xd23   : > { %p25_p2 = scmp.ge.s32.totalorder %s2817_s12, 4   ;;  %s2821_s10 = smov %s2818_s23 }
 0xd25   :  { %27 = sbr.rel (!%p25_p2) target bundleno = 7 (0x7), region = 119 }
 0xd2c   :  { %1657 = vsyncpa [#allocation3], 1 }
 0xd2d   :  { %1659 = vsyncpa [#allocation3 + $0x1], 1 }
 0xd2e   :  { %1660 = vsyncpa [#allocation6], 1 }
 0xd2f   :  { %1661 = vsyncpa [#allocation4], 1 }
 0xd30   :  { %1663 = vsyncpa [#allocation4 + $0x1], 1 }
 0xd31   :  { %1664 = vsyncpa [#allocation9], 1 }
 0xd32   :  { %1666 = vsyncpa [#allocation9 + $0x1], 1 }

// kernel: tpu_custom_call.1
= control target key start
LH: loop header
LB: loop body
LE: loop exit
PB: predicated region body
PF: predicated region fallthrough
CT: control target
= control target key end

     0   :  { %15 = vsyncpa [#allocation3], 0  ;;  %s2787_s0 = inlined_call_operand.vmem [shape: bf16[32,32], index: 0, kind: input, shape index: {}]   ;;  %s2788_s1 = inlined_call_operand.vmem [shape: bf16[64,32], index: 1, kind: input, shape index: {}]   ;;  %s2789_s2 = inlined_call_operand.hbm [shape: bf16[32,64], index: 2, kind: input, shape index: {}]   ;;  %s2790_s3 = inlined_call_operand.hbm [shape: bf16[32,128], index: 3, kind: input, shape index: {}]   ;;  %s2791_s4 = inlined_call_operand.vmem [shape: bf16[64,64], index: 4, kind: input, shape index: {}]   ;;  %s2792_s5 = inlined_call_operand.vmem [shape: f32[1,64], index: 5, kind: input, shape index: {}]   ;;  %s2793_s6 = inlined_call_operand.vmem [shape: f32[1,64], index: 6, kind: input, shape index: {}]   ;;  %s2794_s7 = inlined_call_operand.vmem [shape: f32[1,64], index: 7, kind: input, shape index: {}]   ;;  %s2795_s8 = inlined_call_operand.hbm [shape: f32[32,64], index: 8, kind: output, shape index: {0}]   ;;  %s2796_s9 = inlined_call_operand.hbm [shape: f32[4,4,8,16], index: 9, kind: output, shape index: {1}]  }
   0x1   :  { %16 = vsyncpa [#allocation6], 0 }
   0x2   :  { %17 = vsyncpa [#allocation4], 0 }
   0x3   :  { %19 = vsyncpa [#allocation4 + $0x1], 0 }
   0x4   :  { %20 = vsyncpa [#allocation9], 0 }
   0x5   :  { %22 = vsyncpa [#allocation9 + $0x1], 0  ;;  %s2356_s30 = smov 0   ;;  %s2358_s10 = smov 0  }
   0x6   :  { %s2360_s11 = smov 0   ;;  %s2362_s12 = smov 0  }
   0x7 LB: > { %2803 = sst [smem:[#allocation14_spill]] %s2283_s11  ;;  %s2377_s13 = sadd.s32 4294967295, %s2287_s12   ;;  %s2287_s12 = sphi %s2362_s12, %s2817_s12   ;;  %s2283_s11 = sphi %s2360_s11, %s2819_s11   ;;  %s2279_s10 = sphi %s2358_s10, %s2821_s10   ;;  %s2275_s30 = sphi %s2356_s30, %s2820_s30  }
   0x8   : > { %s1755_s14 = sadd.s32 4294967294, %s2287_s12   ;;  %s2381_s15 = sadd.s32 1, %s2287_s12  }
   0x9   : > { %2804 = sst [smem:[#allocation15_spill]] %s2381_s15  ;;  %s213_s16 = sadd.s32 1, %s2283_s11 }
   0xa   : > { %s210_s17 = ssub.s32 %s2287_s12, %s2381_s15  ;;  %p223_p0 = scmp.ne.s32.totalorder %s2283_s11, %s2279_s10 }
   0xb   : > { %p211_p1 = scmp.eq.s32.totalorder %s210_s17, 0  ;;  %p224_p2 = scmp.eq.s32.totalorder %s2377_s13, 1 }
   0xc   : > { %p229_p3 = scmp.ne.s32.totalorder %s2279_s10, %s2275_s30  ;;  %p230_p4 = scmp.eq.s32.totalorder %s1755_s14, 1 }
   0xd   : > { %s2392_s18 = scalar_select %p211_p1, %s2283_s11, %s213_s16  }
   0xe   : > { %p2394_p5 = por %p224_p2, %p223_p0  ;;  %p2398_p6 = por %p230_p4, %p229_p3 }
   0xf   : > { %2805 = sst [smem:[#allocation16_spill]] %s2392_s18  ;;  %p1756_p7 = scmp.ge.s32.totalorder %s2287_s12, 1 }
  0x10   : > { %s2806_s19 = scalar_select %p2394_p5, 1, 0 }
  0x11   : > { %s2807_s20 = scalar_select %p2398_p6, 1, 0 }
  0x12   : > { %p263_p8 = scmp.lt.s32.totalorder %s2287_s12, 3  ;;  %p2797_p9 = scmp.eq.s32.totalorder %s2377_s13, 0 }
  0x13   : > { %s2289_s22 = smov [#allocation2]   ;;  %s2290_s25 = smov [#allocation5]  }
  0x14   : > { %p2405_p10 = pnand %p1756_p7, %p263_p8  ;;  %s275_s23 = sshll.u32 %s2289_s22, 4  ;;  %s276_s23 = int_to_ptr.vmem [resolvable:$true] %s275_s23 }
  0x15   : > { %s288_s26 = sshll.u32 %s2290_s25, 4  ;;  %s2129_s29 = scalar_lea.hbm %s2789_s2, 256  ;;  %s2417_s26 = int_to_ptr.vmem [resolvable:$true] %s288_s26 }
  0x16   : > { %s2808_s21 = scalar_select %p2405_p10, 1, 0 }
  0x17   : > { %p2001_p11 = pneg %p2405_p10  ;;  %p2130_p13 = scmp.ne.s32.totalorder %s2789_s2, %s2129_s29 }
  0x18   : > { %p2136_p3 = scmp.lt.u32.totalorder %s2129_s29, %s2789_s2 }
  0x19   : > { %p2413_p12 = pnand %p2797_p9, %p2001_p11 }
  0x1b   : > { %p2131_p0 = pneg %p2413_p12 }
  0x1d   : > { %p2132_p1 = pnand %p2131_p0, %p2130_p13 }
  0x1f   : > { %p2133_p2 = pneg %p2132_p1 }
  0x21   : > { %p2138_p4 = pnand %p2136_p3, %p2133_p2 }
  0x23   : > { %2141 = shalt.err (!%p2138_p4)
}
  0x24   : > { %s2142_s25 = scalar_lea.vmem %s276_s23, 256  ;;  %p2150_p9 = scmp.lt.s32.totalorder %s276_s23, %s276_s23 }
  0x25   : > { %p2143_p7 = scmp.ne.s32.totalorder %s276_s23, %s2142_s25  ;;  %p2151_p6 = scmp.lt.s32.totalorder %s2142_s25, %s2142_s25 }
  0x27   : > { %p2145_p8 = pnand %p2143_p7, %p2131_p0  ;;  %p2152_p5 = por %p2151_p6, %p2150_p9 }
  0x29   : > { %p2146_p11 = pneg %p2145_p8 }
  0x2b   : > { %p2153_p10 = pnand %p2152_p5, %p2146_p11 }
  0x2d   : > { %2156 = shalt.err (!%p2153_p10)
}
  0x2e   : > { %s2291_s27 = smov 64   ;;  %s2292_s28 = smov 4  }
  0x2f   : > { %2004 = dma.hbm_to_vmem [thread:$0]  (!%p2413_p12), %s2789_s2, 256, %s276_s23, [#allocation3], %s2291_s27, %s2291_s27, %s2292_s28  }
  0x30   : > { %s2157_s22 = scalar_lea.hbm %s2790_s3, 256 }
  0x31   : > { %p2158_p13 = scmp.ne.s32.totalorder %s2790_s3, %s2157_s22  ;;  %p2164_p9 = scmp.lt.u32.totalorder %s2157_s22, %s2790_s3 }
  0x33   : > { %p2160_p5 = pnand %p2158_p13, %p2131_p0 }
  0x35   : > { %p2161_p6 = pneg %p2160_p5 }
  0x37   : > { %p2166_p10 = pnand %p2164_p9, %p2161_p6 }
  0x39   : > { %2169 = shalt.err (!%p2166_p10)
}
  0x3a   : > { %s2170_s23 = scalar_lea.vmem %s2417_s26, 256  ;;  %p2178_p4 = scmp.lt.s32.totalorder %s2417_s26, %s2417_s26 }
  0x3b   : > { %p2171_p1 = scmp.ne.s32.totalorder %s2417_s26, %s2170_s23  ;;  %p2179_p7 = scmp.lt.s32.totalorder %s2170_s23, %s2170_s23 }
  0x3d   : > { %p2173_p2 = pnand %p2171_p1, %p2131_p0  ;;  %p2180_p8 = por %p2179_p7, %p2178_p4 }
  0x3f   : > { %p2174_p3 = pneg %p2173_p2 }
  0x41   : > { %p2181_p11 = pnand %p2180_p8, %p2174_p3 }
  0x43   : > { %2184 = shalt.err (!%p2181_p11)
}
  0x44   : > { %2007 = dma.hbm_to_vmem [thread:$0]  (!%p2413_p12), %s2790_s3, 256, %s2417_s26, [#allocation6], %s2291_s27, %s2291_s27, %s2292_s28  }
  0x45   : > { %p2810_p13 = scmp.ne.s32.totalorder %s2808_s21, 0 }
  0x46   : > { %p2811_p5 = scmp.eq.s32.totalorder (!%p2810_p13), %s2377_s13, 0 }
  0x47   : > { %334 = sbr.rel (%p2810_p13) target bundleno = 3349 (0xd15), region = 52 }
  0x4e   : > { %2258 = dma.done.wait (%p2811_p5), [#allocation3], 256   ;;  %p2812_p0 = pmov %p2811_p5 }
  0x50   : > { %2260 = vsyncadd (%p2812_p0), [#allocation3], 4294967040  ;;  %p2813_p6 = pmov %p2812_p0 }
  0x51   : > { %p2814_p9 = pmov %p2812_p0 }
  0x52   : > { %2262 = dma.done.wait (%p2813_p6), [#allocation6], 256  }
  0x53   : > { %2264 = vsyncadd (%p2814_p9), [#allocation6], 4294967040  ;;  %s1765_s18 = sshll.u32 %s2377_s13, 1  ;;  %v2293_v0 = vmov 0.0   ;;  %vm2294_vm0 = vmmov 0   ;;  %s1767_s21 = sshll.u32 %s2377_s13, 2 }
  0x54   : > { %1865 = vmatprep.subr.bf16.mxu1 %v2293_v0  ;;  %1869 = vmatprep.mubr.msk.bf16.mxu1 %vm2294_vm0, %v2293_v0  ;;  %p385_p12 = scmp.lt.s32.totalorder %s1765_s18, 3  ;;  %p391_p10 = scmp.lt.s32.totalorder %s1767_s21, 7  ;;  %v2082_v1 = vld [vmem:[#allocation2] sm:$0xff]   ;;  %v2083_v2 = vld [vmem:[#allocation2 + $0x8] sm:$0xff]   ;;  %v2085_v3 = vld [vmem:[#allocation5] sm:$0xff]   ;;  %vm422_vm1 = vcmask 261120  }
  0x55   : > { %1881 = vmatprep.subr.bf16.mxu0 %v2293_v0  ;;  %1883 = vmatprep.mubr.msk.bf16.mxu0 %vm2294_vm0, %v2293_v0  ;;  %v2086_v5 = vld [vmem:[#allocation5 + $0x8] sm:$0xff]   ;;  %vm556_vm2 = vcmask 130048   ;;  %s2295_s22 = smov 64   ;;  %s2296_s25 = smov 112   ;;  %vm1456_vm3 = vcmask 392192   ;;  %vm1499_vm4 = vcmask 523264  }
  0x56   : > { %s2823_s18 = smov (!%p385_p12, %s1765_s18), 3  ;;  %s2825_s21 = smov (!%p391_p10, %s1767_s21), 7  ;;  %1866 = vmatpush3.bf16.msra.mxu1 %v2082_v1 }
  0x57   : > { %s1766_s24 = sshll.u32 %s2823_s18, 2  ;;  %s1768_s26 = sshll.u32 %s2825_s21, 2  ;;  %1867 = vmatprep.subr.bf16.mxu1 %v2293_v0 }
  0x58   : > { %s388_s29 = scalar_lea.vmem %s2787_s0, %s1766_s24  ;;  %s394_s17 = scalar_lea.vmem %s2788_s1, %s1768_s26 }
  0x59   : > { %v2084_v4 = vld [vmem:[%s388_s29] sm:$0xff]   ;;  %v2088_v7 = vld [vmem:[%s394_s17 + $0x8] sm:$0xff]   ;;  %s2538_s23 = sand.u32 1, %s2279_s10   ;;  %s2297_s18 = smov 48  }
  0x5a   : > { %1868 = vmatpush3.bf16.msra.mxu1 %v2083_v2  ;;  %v2087_v6 = vld [vmem:[%s394_s17] sm:$0xff]   ;;  %s1764_s11 = sshll.u32 %s2538_s23, 6  ;;  %s2298_s21 = smov 96  }
  0x5b   : > { %1873 = vmatprep.subr.bf16.mxu1 %v2085_v3  ;;  %s2541_s15 = scalar_lea.vmem [#allocation8], %s1764_s11  ;;  %s2299_s24 = smov 32  }
  0x5c   : > { %s2300_s26 = smov 80   ;;  %s2301_s27 = smov 16  }
  0x5d   : > { %1870 = vmatmul.mubr.msk.bf16.vlgmr.msra.gmra.mrb[0].mxu1 %vm422_vm1, %v2084_v4  ;;  %s1627_s29 = sshll.u32 %s2541_s15, 4  ;;  %s1597_s14 = scalar_lea.sflag [#allocation9], %s2538_s23  ;;  %s2697_s29 = int_to_ptr.vmem [resolvable:$true] %s1627_s29 }
  0x5e   : > { %1874 = vmatpush3.bf16.msra.mxu1 %v2085_v3  ;;  %1877 = vmatprep.mubr.msk.bf16.mxu1 %vm422_vm1, %v2087_v6  ;;  %s2185_s16 = scalar_lea.vmem %s2697_s29, 1024  ;;  %p2815_p2 = scmp.ne.s32.totalorder %s2806_s19, 0 }
  0x5f   : > { %1875 = vmatprep.subr.bf16.mxu1 %v2086_v5  ;;  %p2186_p1 = scmp.ne.s32.totalorder %s2697_s29, %s2185_s16  ;;  %s2302_s17 = smov [#allocation8]  }
  0x61   : > { %p2187_p3 = pnand %p2186_p1, %p2815_p2 }
  0x62   : > { %1876 = vmatpush3.bf16.msra.mxu1 %v2086_v5 }
  0x63   : > { %1887 = vmatprep.subr.bf16.mxu1 %v2293_v0  ;;  %p2188_p4 = pneg %p2187_p3 }
  0x65   : > { %1878 = vmatmul.mubr.msk.bf16.vlgmr.msra.gmra.mrb[4].mxu1 %vm422_vm1, %v2088_v7 }
  0x66   : > { %1889 = vmatprep.mubr.msk.bf16.mxu1 %vm2294_vm0, %v2293_v0 }
 0x130   : > { %v460_v8 = vpop.f32.mrb[0].mxu1 }
 0x131   : > { %v1871_v9 = vpop.f32.mrb[1].mxu1  ;;  %v2513_v21 = vpack.c.bf16 %v460_v8, %v460_v8 }
 0x132   : > { %v463_v10 = vpop.f32.mrb[2].mxu1 }
 0x133   : > { %v1872_v11 = vpop.f32.mrb[3].mxu1  ;;  %v2511_v20 = vpack.c.bf16 %v463_v10, %v463_v10 }
 0x138   : > { %v1879_v12 = vpop.f32.mrb[4].mxu1 }
 0x139   : > { %v537_v13 = vpop.f32.mrb[5].mxu1 }
 0x13a   : > { %v1880_v14 = vpop.f32.mrb[6].mxu1 }
 0x13b   : > { %v2497_v15 = vpack.c.bf16 %v1880_v14, %v1879_v12  ;;  %v540_v16 = vpop.f32.mrb[7].mxu1 }
 0x13c   : > { %v2499_v17 = vpack.c.bf16 %v540_v16, %v537_v13 }
 0x13d   : > { %723 = vrot.lane.b32.xlu1 %v2497_v15, %s2295_s22  ;;  %v607_v18 = vsel %vm556_vm2, %v2497_v15, 0 }
 0x13e   : > { %1888 = vmatpush3.bf16.xpose.msra.mxu1 %v607_v18  ;;  %v561_v19 = vsel %vm556_vm2, %v2499_v17, 0 }
 0x13f   : > { %1882 = vmatpush3.bf16.xpose.msra.mxu0 %v561_v19  ;;  %1899 = vmatprep.subr.bf16.mxu1 %v2293_v0 }
 0x140   : > { %1893 = vmatprep.subr.bf16.mxu0 %v2293_v0 }
 0x141   : > { %772 = vrot.lane.b32.xlu1 %v2499_v17, %s2296_s25 }
 0x145   : > { %1890 = vmatmul.mubr.msk.bf16.vlgmr.msra.gmra.mrb[8].mxu1 %vm556_vm2, %v2511_v20 }
 0x146   : > { %1884 = vmatmul.mubr.msk.bf16.vlgmr.msra.gmra.mrb[0].mxu0 %vm556_vm2, %v2513_v21  ;;  %1901 = vmatprep.mubr.msk.bf16.mxu1 %vm2294_vm0, %v2293_v0 }
 0x147   : > { %1895 = vmatprep.mubr.msk.bf16.mxu0 %vm2294_vm0, %v2293_v0 }
 0x1af   : > { %v724_v22 = vpop.permute.xlu1 %723 }
 0x1b0   : > { %1900 = vmatpush3.bf16.msra.mxu1 %v724_v22 }
 0x1b1   : > { %1911 = vmatprep.subr.bf16.mxu1 %v2293_v0 }
 0x1b3   : > { %v773_v44 = vpop.permute.xlu1 %772 }
 0x1b4   : > { %v778_v55 = vsel %vm556_vm2, %v773_v44, 0 }
 0x218   : > { %v643_v23 = vpop.f32.mrb[8].mxu1 }
 0x219   : > { %v597_v24 = vpop.f32.mrb[0].mxu0  ;;  %v1891_v25 = vpop.f32.mrb[9].mxu1  ;;  %v652_v32 = vsel %vm556_vm2, %v643_v23, -inf }
 0x21a   : > { %v1885_v26 = vpop.f32.mrb[1].mxu0  ;;  %v646_v27 = vpop.f32.mrb[10].mxu1  ;;  %v649_v28 = vsel %vm556_vm2, %v597_v24, -inf }
 0x21b   : > { %v1892_v29 = vpop.f32.mrb[11].mxu1  ;;  %650 = vmax.xlane.f32.xlu0 %v649_v28  ;;  %v600_v30 = vpop.f32.mrb[2].mxu0 }
 0x21c   : > { %v1886_v31 = vpop.f32.mrb[3].mxu0 }
 0x21f   : > { %653 = vmax.xlane.f32.xlu0 %v652_v32 }
 0x235   : > { %676 = vrot.lane.b32.xlu0 %v2499_v17, %s2295_s22  ;;  %s2189_s22 = sshll.u32 %s2302_s17, 4  ;;  %s2190_s22 = int_to_ptr.vmem [resolvable:$false] %s2189_s22 }
 0x236   : > { %p2192_p7 = scmp.lt.s32.totalorder %s2697_s29, %s2190_s22 }
 0x239   : > { %770 = vrot.lane.b32.xlu0 %v2513_v21, %s2296_s25 }
 0x2a8   : > { %v651_v33 = vpop.xlane.xlu0 %650 }
 0x2a9   : > { %v655_v34 = vsub.f32 %v597_v24, %v651_v33 }
 0x2ab   : > { %v657_v37 = vmul.f32 1.442695, %v655_v34 }
 0x2ac   : > { %v654_v35 = vpop.xlane.xlu0 %653 }
 0x2ad   : > { %v656_v36 = vsub.f32 %v643_v23, %v654_v35 }
 0x2af   : > { %v659_v38 = vmul.f32 1.442695, %v656_v36 }
 0x2b0   : > { %v677_v39 = vpop.permute.xlu0 %676 }
 0x2b1   : > { %2093 = vpow2.f32 %v659_v38  ;;  %1894 = vmatpush3.bf16.msra.mxu0 %v677_v39 }
 0x2b2   : > { %1905 = vmatprep.subr.bf16.mxu0 %v2293_v0  ;;  %2095 = vpow2.f32 %v657_v37 }
 0x2b4   : > { %v771_v57 = vpop.permute.xlu0 %770 }
 0x2bb   : > { %v2094_v40 = vpop.eup %2093 }
 0x2bc   : > { %v664_v41 = vsel %vm556_vm2, %v2094_v40, 0.0  ;;  %v2096_v42 = vpop.eup %2095 }
 0x2bd   : > { %665 = vadd.xlane.f32.xlu1 %v664_v41  ;;  %v661_v43 = vsel %vm556_vm2, %v2096_v42, 0.0 }
 0x2c1   : > { %662 = vadd.xlane.f32.xlu1 %v661_v43 }
 0x2d2   : > { %823 = vrot.lane.b32.xlu1 %v2497_v15, %s2296_s25 }
 0x2d6   : > { %821 = vrot.lane.b32.xlu1 %v2511_v20, %s2296_s25  ;;  %s2191_s25 = scalar_lea.vmem %s2190_s22, 2048 }
 0x2d7   : > { %p2193_p8 = scmp.lt.s32.totalorder %s2191_s25, %s2185_s16 }
 0x2d9   : > { %p2194_p11 = por %p2193_p8, %p2192_p7 }
 0x2db   : > { %p2195_p13 = pnand %p2194_p11, %p2188_p4 }
 0x34a   : > { %v666_v45 = vpop.xlane.xlu1 %665 }
 0x34b   : > { %2097 = vrcp.f32 %v666_v45 }
 0x34e   : > { %v663_v46 = vpop.xlane.xlu1 %662 }
 0x34f   : > { %2099 = vrcp.f32 %v663_v46 }
 0x352   : > { %v824_v49 = vpop.permute.xlu1 %823 }
 0x353   : > { %v829_v53 = vsel %vm556_vm2, %v824_v49, 0 }
 0x355   : > { %v2098_v47 = vpop.eup %2097 }
 0x356   : > { %v670_v48 = vmul.f32 %v2098_v47, %v2094_v40  ;;  %v822_v56 = vpop.permute.xlu1 %821 }
 0x358   : > { %672 = vst.msk [vmem:[%s2541_s15 + $0x20] sm:$0xff] %vm556_vm2, %v670_v48  ;;  %v674_v50 = vpack.c.bf16 %v670_v48, %v670_v48 }
 0x359   : > { %v2100_v51 = vpop.eup %2099 }
 0x35a   : > { %v669_v52 = vmul.f32 %v2100_v51, %v2096_v42  ;;  %1902 = vmatmul.mubr.msk.bf16.vlgmr.msra.gmra.mrb[12].mxu1 %vm556_vm2, %v674_v50 }
 0x35b   : > { %1912 = vmatpush3.bf16.xpose.msra.mxu1 %v829_v53  ;;  %1913 = vmatprep.mubr.msk.bf16.mxu1 %vm2294_vm0, %v2293_v0 }
 0x35c   : > { %671 = vst.msk [vmem:[%s2541_s15] sm:$0xff] %vm556_vm2, %v669_v52  ;;  %v673_v54 = vpack.c.bf16 %v669_v52, %v669_v52  ;;  %1923 = vmatprep.subr.bf16.mxu1 %v2293_v0 }
 0x35e   : > { %1896 = vmatmul.mubr.msk.bf16.vlgmr.msra.gmra.mrb[4].mxu0 %vm556_vm2, %v673_v54 }
 0x35f   : > { %1906 = vmatpush3.bf16.xpose.msra.mxu0 %v778_v55  ;;  %1907 = vmatprep.mubr.msk.bf16.mxu0 %vm2294_vm0, %v2293_v0 }
 0x360   : > { %1917 = vmatprep.subr.bf16.mxu0 %v2293_v0 }
 0x362   : > { %1914 = vmatmul.mubr.msk.bf16.vlgmr.msra.gmra.mrb[16].mxu1 %vm556_vm2, %v822_v56 }
 0x363   : > { %1925 = vmatprep.mubr.msk.bf16.mxu1 %vm2294_vm0, %v2293_v0 }
 0x366   : > { %1908 = vmatmul.mubr.msk.bf16.vlgmr.msra.gmra.mrb[8].mxu0 %vm556_vm2, %v771_v57 }
 0x367   : > { %1919 = vmatprep.mubr.msk.bf16.mxu0 %vm2294_vm0, %v2293_v0 }
 0x42d   : > { %v2563_v58 = vpop.f32.mrb[12].mxu1 }
 0x42e   : > { %v1903_v59 = vpop.f32.mrb[13].mxu1 }
 0x42f   : > { %v766_v60 = vpop.f32.mrb[14].mxu1 }
 0x430   : > { %v1904_v61 = vpop.f32.mrb[15].mxu1 }
 0x431   : > { %v2565_v62 = vpop.f32.mrb[4].mxu0 }
 0x432   : > { %v1897_v63 = vpop.f32.mrb[5].mxu0 }
 0x433   : > { %v719_v1 = vpop.f32.mrb[6].mxu0 }
 0x434   : > { %v1898_v2 = vpop.f32.mrb[7].mxu0 }
 0x435   : > { %v865_v3 = vpop.f32.mrb[16].mxu1 }
 0x436   : > { %v1915_v4 = vpop.f32.mrb[17].mxu1  ;;  %v874_v5 = vsel %vm556_vm2, %v865_v3, -inf }
 0x437   : > { %875 = vmax.xlane.f32.xlu1 %v874_v5  ;;  %v868_v6 = vpop.f32.mrb[18].mxu1 }
 0x438   : > { %v1916_v7 = vpop.f32.mrb[19].mxu1 }
 0x439   : > { %v814_v8 = vpop.f32.mrb[8].mxu0 }
 0x43a   : > { %v1909_v9 = vpop.f32.mrb[9].mxu0  ;;  %v871_v10 = vsel %vm556_vm2, %v814_v8, -inf }
 0x43b   : > { %872 = vmax.xlane.f32.xlu0 %v871_v10  ;;  %v817_v11 = vpop.f32.mrb[10].mxu0 }
 0x43c   : > { %v1910_v12 = vpop.f32.mrb[11].mxu0 }
 0x448   : > { %944 = vrot.lane.b32.xlu1 %v2497_v15, %s2297_s18 }
 0x44c   : > { %992 = vrot.lane.b32.xlu1 %v2499_v17, %s2298_s21 }
 0x450   : > { %1042 = vrot.lane.b32.xlu1 %v2497_v15, %s2298_s21 }
 0x454   : > { %1040 = vrot.lane.b32.xlu1 %v2511_v20, %s2298_s21 }
 0x4c4   : > { %v876_v13 = vpop.xlane.xlu1 %875 }
 0x4c5   : > { %v878_v14 = vsub.f32 %v865_v3, %v876_v13 }
 0x4c7   : > { %v881_v16 = vmul.f32 1.442695, %v878_v14 }
 0x4c8   : > { %v945_v18 = vpop.permute.xlu1 %944  ;;  %v873_v19 = vpop.xlane.xlu0 %872 }
 0x4c9   : > { %2101 = vpow2.f32 %v881_v16  ;;  %v877_v22 = vsub.f32 %v814_v8, %v873_v19  ;;  %1924 = vmatpush3.bf16.msra.mxu1 %v945_v18 }
 0x4ca   : > { %1935 = vmatprep.subr.bf16.mxu1 %v2293_v0 }
 0x4cb   : > { %v879_v23 = vmul.f32 1.442695, %v877_v22 }
 0x4cc   : > { %v993_v30 = vpop.permute.xlu1 %992 }
 0x4cd   : > { %2103 = vpow2.f32 %v879_v23  ;;  %v998_v40 = vsel %vm556_vm2, %v993_v30, 0 }
 0x4d0   : > { %v1043_v34 = vpop.permute.xlu1 %1042 }
 0x4d1   : > { %v1048_v37 = vsel %vm556_vm2, %v1043_v34, 0 }
 0x4d3   : > { %v2102_v24 = vpop.eup %2101 }
 0x4d4   : > { %v886_v25 = vsel %vm556_vm2, %v2102_v24, 0.0  ;;  %v1041_v41 = vpop.permute.xlu1 %1040 }
 0x4d5   : > { %887 = vadd.xlane.f32.xlu0 %v886_v25 }
 0x4d7   : > { %v2104_v26 = vpop.eup %2103 }
 0x4d8   : > { %v883_v27 = vsel %vm556_vm2, %v2104_v26, 0.0 }
 0x4d9   : > { %884 = vadd.xlane.f32.xlu0 %v883_v27 }
 0x4ef   : > { %898 = vrot.lane.b32.xlu0 %v2499_v17, %s2297_s18 }
 0x4f3   : > { %990 = vrot.lane.b32.xlu0 %v2513_v21, %s2298_s21 }
 0x562   : > { %v888_v28 = vpop.xlane.xlu0 %887 }
 0x563   : > { %2105 = vrcp.f32 %v888_v28 }
 0x566   : > { %v885_v29 = vpop.xlane.xlu0 %884 }
 0x567   : > { %2107 = vrcp.f32 %v885_v29 }
 0x56a   : > { %v899_v31 = vpop.permute.xlu0 %898 }
 0x56b   : > { %1918 = vmatpush3.bf16.msra.mxu0 %v899_v31 }
 0x56c   : > { %1929 = vmatprep.subr.bf16.mxu0 %v2293_v0 }
 0x56d   : > { %v2106_v32 = vpop.eup %2105 }
 0x56e   : > { %v892_v33 = vmul.f32 %v2106_v32, %v2102_v24  ;;  %v991_v42 = vpop.permute.xlu0 %990 }
 0x570   : > { %1786 = vst.msk [vmem:[%s2541_s15 + $0x28] sm:$0xff] %vm556_vm2, %v892_v33  ;;  %v897_v35 = vpack.c.bf16 %v892_v33, %v892_v33 }
 0x571   : > { %v2108_v36 = vpop.eup %2107 }
 0x572   : > { %v891_v38 = vmul.f32 %v2108_v36, %v2104_v26  ;;  %1926 = vmatmul.mubr.msk.bf16.vlgmr.msra.gmra.mrb[20].mxu1 %vm556_vm2, %v897_v35 }
 0x573   : > { %1936 = vmatpush3.bf16.xpose.msra.mxu1 %v1048_v37  ;;  %1937 = vmatprep.mubr.msk.bf16.mxu1 %vm2294_vm0, %v2293_v0 }
 0x574   : > { %1785 = vst.msk [vmem:[%s2541_s15 + $0x8] sm:$0xff] %vm556_vm2, %v891_v38  ;;  %v896_v39 = vpack.c.bf16 %v891_v38, %v891_v38  ;;  %1947 = vmatprep.subr.bf16.mxu1 %v2293_v0 }
 0x576   : > { %1920 = vmatmul.mubr.msk.bf16.vlgmr.msra.gmra.mrb[12].mxu0 %vm556_vm2, %v896_v39 }
 0x577   : > { %1930 = vmatpush3.bf16.xpose.msra.mxu0 %v998_v40  ;;  %1931 = vmatprep.mubr.msk.bf16.mxu0 %vm2294_vm0, %v2293_v0 }
 0x578   : > { %1941 = vmatprep.subr.bf16.mxu0 %v2293_v0 }
 0x57a   : > { %1938 = vmatmul.mubr.msk.bf16.vlgmr.msra.gmra.mrb[24].mxu1 %vm556_vm2, %v1041_v41 }
 0x57b   : > { %1949 = vmatprep.mubr.msk.bf16.mxu1 %vm2294_vm0, %v2293_v0 }
 0x57e   : > { %1932 = vmatmul.mubr.msk.bf16.vlgmr.msra.gmra.mrb[16].mxu0 %vm556_vm2, %v991_v42 }
 0x57f   : > { %1943 = vmatprep.mubr.msk.bf16.mxu0 %vm2294_vm0, %v2293_v0 }
 0x645   : > { %v2601_v43 = vpop.f32.mrb[20].mxu1 }
 0x646   : > { %v1927_v44 = vpop.f32.mrb[21].mxu1 }
 0x647   : > { %v987_v45 = vpop.f32.mrb[22].mxu1 }
 0x648   : > { %v1928_v46 = vpop.f32.mrb[23].mxu1 }
 0x649   : > { %v2603_v47 = vpop.f32.mrb[12].mxu0 }
 0x64a   : > { %v2067_v48 = vpack.i.bf16 %v2601_v43, %v2603_v47  ;;  %v1921_v49 = vpop.f32.mrb[13].mxu0 }
 0x64b   : > { %v941_v50 = vpop.f32.mrb[14].mxu0 }
 0x64c   : > { %v1922_v51 = vpop.f32.mrb[15].mxu0 }
 0x64d   : > { %v1084_v52 = vpop.f32.mrb[24].mxu1 }
 0x64e   : > { %v1939_v53 = vpop.f32.mrb[25].mxu1  ;;  %v1093_v54 = vsel %vm556_vm2, %v1084_v52, -inf }
 0x64f   : > { %1094 = vmax.xlane.f32.xlu1 %v1093_v54  ;;  %v1087_v55 = vpop.f32.mrb[26].mxu1 }
 0x650   : > { %v1940_v56 = vpop.f32.mrb[27].mxu1 }
 0x651   : > { %v1034_v57 = vpop.f32.mrb[16].mxu0 }
 0x652   : > { %v1933_v59 = vpop.f32.mrb[17].mxu0  ;;  %v1090_v60 = vsel %vm556_vm2, %v1034_v57, -inf }
 0x653   : > { %1091 = vmax.xlane.f32.xlu0 %v1090_v60  ;;  %v1037_v61 = vpop.f32.mrb[18].mxu0 }
 0x654   : > { %v1934_v63 = vpop.f32.mrb[19].mxu0 }
 0x660   : > { %1163 = vrot.lane.b32.xlu1 %v2497_v15, %s2299_s24 }
 0x664   : > { %1211 = vrot.lane.b32.xlu1 %v2499_v17, %s2300_s26 }
 0x668   : > { %1261 = vrot.lane.b32.xlu1 %v2497_v15, %s2300_s26 }
 0x66c   : > { %1259 = vrot.lane.b32.xlu1 %v2511_v20, %s2300_s26 }
 0x6dc   : > { %v1095_v1 = vpop.xlane.xlu1 %1094 }
 0x6dd   : > { %v1097_v2 = vsub.f32 %v1084_v52, %v1095_v1 }
 0x6df   : > { %v1100_v3 = vmul.f32 1.442695, %v1097_v2 }
 0x6e0   : > { %v1164_v4 = vpop.permute.xlu1 %1163  ;;  %v1092_v5 = vpop.xlane.xlu0 %1091 }
 0x6e1   : > { %2109 = vpow2.f32 %v1100_v3  ;;  %v1096_v6 = vsub.f32 %v1034_v57, %v1092_v5  ;;  %1948 = vmatpush3.bf16.msra.mxu1 %v1164_v4  ;;  %v2089_v5 = vld [vmem:[%s2791_s4] sm:$0xff]  }
 0x6e2   : > { %1959 = vmatprep.subr.bf16.mxu1 %v2293_v0 }
 0x6e3   : > { %v1098_v7 = vmul.f32 1.442695, %v1096_v6  ;;  %v2090_v6 = vld [vmem:[%s2791_s4 + $0x8] sm:$0xff]  }
 0x6e4   : > { %v1212_v13 = vpop.permute.xlu1 %1211 }
 0x6e5   : > { %2111 = vpow2.f32 %v1098_v7  ;;  %v1217_v26 = vsel %vm556_vm2, %v1212_v13, 0  ;;  %v2091_v7 = vld [vmem:[%s2791_s4 + $0x10] sm:$0xff]  }
 0x6e8   : > { %v1262_v19 = vpop.permute.xlu1 %1261 }
 0x6e9   : > { %v1267_v24 = vsel %vm556_vm2, %v1262_v19, 0 }
 0x6eb   : > { %v2110_v8 = vpop.eup %2109 }
 0x6ec   : > { %v1105_v9 = vsel %vm556_vm2, %v2110_v8, 0.0  ;;  %v1260_v27 = vpop.permute.xlu1 %1259 }
 0x6ed   : > { %1106 = vadd.xlane.f32.xlu0 %v1105_v9 }
 0x6ef   : > { %v2112_v10 = vpop.eup %2111 }
 0x6f0   : > { %v1102_v20 = vsel %vm556_vm2, %v2112_v10, 0.0 }
 0x6f1   : > { %1103 = vadd.xlane.f32.xlu0 %v1102_v20 }
 0x707   : > { %1117 = vrot.lane.b32.xlu0 %v2499_v17, %s2299_s24 }
 0x70b   : > { %1209 = vrot.lane.b32.xlu0 %v2513_v21, %s2300_s26 }
 0x77a   : > { %v1107_v11 = vpop.xlane.xlu0 %1106 }
 0x77b   : > { %2113 = vrcp.f32 %v1107_v11 }
 0x77e   : > { %v1104_v12 = vpop.xlane.xlu0 %1103 }
 0x77f   : > { %2115 = vrcp.f32 %v1104_v12 }
 0x782   : > { %v1118_v14 = vpop.permute.xlu0 %1117 }
 0x783   : > { %1942 = vmatpush3.bf16.msra.mxu0 %v1118_v14 }
 0x784   : > { %1953 = vmatprep.subr.bf16.mxu0 %v2293_v0 }
 0x785   : > { %v2114_v16 = vpop.eup %2113 }
 0x786   : > { %v1111_v18 = vmul.f32 %v2114_v16, %v2110_v8  ;;  %v1210_v28 = vpop.permute.xlu0 %1209  ;;  %v2092_v8 = vld [vmem:[%s2791_s4 + $0x18] sm:$0xff]  }
 0x788   : > { %1792 = vst.msk [vmem:[%s2541_s15 + $0x30] sm:$0xff] %vm556_vm2, %v1111_v18  ;;  %v1116_v22 = vpack.c.bf16 %v1111_v18, %v1111_v18 }
 0x789   : > { %v2116_v23 = vpop.eup %2115 }
 0x78a   : > { %v1110_v21 = vmul.f32 %v2116_v23, %v2112_v10  ;;  %1950 = vmatmul.mubr.msk.bf16.vlgmr.msra.gmra.mrb[28].mxu1 %vm556_vm2, %v1116_v22 }
 0x78b   : > { %1960 = vmatpush3.bf16.xpose.msra.mxu1 %v1267_v24  ;;  %1961 = vmatprep.mubr.msk.bf16.mxu1 %vm2294_vm0, %v2293_v0 }
 0x78c   : > { %1791 = vst.msk [vmem:[%s2541_s15 + $0x10] sm:$0xff] %vm556_vm2, %v1110_v21  ;;  %v1115_v25 = vpack.c.bf16 %v1110_v21, %v1110_v21  ;;  %1971 = vmatprep.subr.bf16.mxu1 %v2293_v0 }
 0x78e   : > { %1944 = vmatmul.mubr.msk.bf16.vlgmr.msra.gmra.mrb[20].mxu0 %vm556_vm2, %v1115_v25 }
 0x78f   : > { %1954 = vmatpush3.bf16.xpose.msra.mxu0 %v1217_v26  ;;  %1955 = vmatprep.mubr.msk.bf16.mxu0 %vm2294_vm0, %v2293_v0 }
 0x790   : > { %1965 = vmatprep.subr.bf16.mxu0 %v2293_v0 }
 0x792   : > { %1962 = vmatmul.mubr.msk.bf16.vlgmr.msra.gmra.mrb[32].mxu1 %vm556_vm2, %v1260_v27 }
 0x793   : > { %1973 = vmatprep.mubr.msk.bf16.mxu1 %vm2294_vm0, %v2293_v0 }
 0x796   : > { %1956 = vmatmul.mubr.msk.bf16.vlgmr.msra.gmra.mrb[24].mxu0 %vm556_vm2, %v1210_v28 }
 0x797   : > { %1967 = vmatprep.mubr.msk.bf16.mxu0 %vm2294_vm0, %v2293_v0 }
 0x85d   : > { %v1203_v29 = vpop.f32.mrb[28].mxu1 }
 0x85e   : > { %v1951_v30 = vpop.f32.mrb[29].mxu1 }
 0x85f   : > { %v1206_v31 = vpop.f32.mrb[30].mxu1 }
 0x860   : > { %v1952_v32 = vpop.f32.mrb[31].mxu1 }
 0x861   : > { %v1157_v33 = vpop.f32.mrb[20].mxu0 }
 0x862   : > { %v2072_v34 = vpack.i.bf16 %v1203_v29, %v1157_v33  ;;  %v1945_v35 = vpop.f32.mrb[21].mxu0 }
 0x863   : > { %v1160_v36 = vpop.f32.mrb[22].mxu0  ;;  %v1801_v35 = vld [vmem:[%s2792_s5] ss:$0 sm:$0xff] }
 0x864   : > { %v1946_v37 = vpop.f32.mrb[23].mxu0 }
 0x865   : > { %v1303_v38 = vpop.f32.mrb[32].mxu1 }
 0x866   : > { %v1963_v39 = vpop.f32.mrb[33].mxu1  ;;  %v1312_v40 = vsel %vm556_vm2, %v1303_v38, -inf }
 0x867   : > { %1313 = vmax.xlane.f32.xlu1 %v1312_v40  ;;  %v1306_v41 = vpop.f32.mrb[34].mxu1 }
 0x868   : > { %v1964_v42 = vpop.f32.mrb[35].mxu1 }
 0x869   : > { %v1253_v44 = vpop.f32.mrb[24].mxu0 }
 0x86a   : > { %v1957_v45 = vpop.f32.mrb[25].mxu0  ;;  %v1309_v46 = vsel %vm556_vm2, %v1253_v44, -inf }
 0x86b   : > { %1310 = vmax.xlane.f32.xlu0 %v1309_v46  ;;  %v1256_v49 = vpop.f32.mrb[26].mxu0 }
 0x86c   : > { %v1958_v50 = vpop.f32.mrb[27].mxu0 }
 0x878   : > { %1382 = vrot.lane.b32.xlu1 %v2497_v15, %s2301_s27 }
 0x87c   : > { %2068 = vrot.lane.b32.xlu1 %v2067_v48, %s2301_s27 }
 0x880   : > { %2073 = vrot.lane.b32.xlu1 %v2072_v34, %s2299_s24  ;;  %s1820_s24 = sshll.u32 %s2377_s13, 10 }
 0x881   : > { %s2694_s28 = scalar_lea.hbm %s2796_s9, %s1820_s24 }
 0x8f4   : > { %v1314_v51 = vpop.xlane.xlu1 %1313 }
 0x8f5   : > { %v1316_v52 = vsub.f32 %v1303_v38, %v1314_v51 }
 0x8f7   : > { %v1319_v53 = vmul.f32 1.442695, %v1316_v52 }
 0x8f8   : > { %v1383_v54 = vpop.permute.xlu1 %1382  ;;  %v1311_v55 = vpop.xlane.xlu0 %1310 }
 0x8f9   : > { %2117 = vpow2.f32 %v1319_v53  ;;  %v1315_v56 = vsub.f32 %v1253_v44, %v1311_v55  ;;  %1972 = vmatpush3.bf16.msra.mxu1 %v1383_v54 }
 0x8fb   : > { %v1317_v57 = vmul.f32 1.442695, %v1315_v56 }
 0x8fc   : > { %v2069_v19 = vpop.permute.xlu1 %2068 }
 0x8fd   : > { %2119 = vpow2.f32 %v1317_v57  ;;  %v2071_v23 = vunpack.i.h.bf16 %v2069_v19 }
 0x8ff   : > { %v1453_v26 = vsel %vm556_vm2, %v2563_v58, %v2071_v23 }
 0x900   : > { %v2074_v22 = vpop.permute.xlu1 %2073 }
 0x901   : > { %v2076_v24 = vunpack.i.h.bf16 %v2074_v22  ;;  %v2075_v21 = vunpack.i.l.bf16 %v2074_v22 }
 0x903   : > { %v2118_v59 = vpop.eup %2117  ;;  %v1455_v30 = vsel %vm422_vm1, %v1453_v26, %v2076_v24 }
 0x904   : > { %v1324_v15 = vsel %vm556_vm2, %v2118_v59, 0.0 }
 0x905   : > { %1325 = vadd.xlane.f32.xlu0 %v1324_v15 }
 0x907   : > { %v2120_v60 = vpop.eup %2119 }
 0x908   : > { %v1321_v43 = vsel %vm556_vm2, %v2120_v60, 0.0 }
 0x909   : > { %1322 = vadd.xlane.f32.xlu0 %v1321_v43 }
 0x91f   : > { %1336 = vrot.lane.b32.xlu0 %v2499_v17, %s2301_s27 }
 0x992   : > { %v1326_v47 = vpop.xlane.xlu0 %1325 }
 0x993   : > { %2121 = vrcp.f32 %v1326_v47 }
 0x996   : > { %v1323_v48 = vpop.xlane.xlu0 %1322 }
 0x997   : > { %2123 = vrcp.f32 %v1323_v48 }
 0x99a   : > { %v1337_v61 = vpop.permute.xlu0 %1336 }
 0x99b   : > { %1966 = vmatpush3.bf16.msra.mxu0 %v1337_v61 }
 0x99c   : > { %1977 = vmatprep.subr.bf16.mxu0 %v2293_v0 }
 0x99d   : > { %v2122_v63 = vpop.eup %2121 }
 0x99e   : > { %v1330_v1 = vmul.f32 %v2122_v63, %v2118_v59 }
 0x9a0   : > { %1798 = vst.msk [vmem:[%s2541_s15 + $0x38] sm:$0xff] %vm556_vm2, %v1330_v1  ;;  %v1335_v2 = vpack.c.bf16 %v1330_v1, %v1330_v1 }
 0x9a1   : > { %v2124_v3 = vpop.eup %2123 }
 0x9a2   : > { %v1329_v4 = vmul.f32 %v2124_v3, %v2120_v60  ;;  %1974 = vmatmul.mubr.msk.bf16.vlgmr.msra.gmra.mrb[36].mxu1 %vm556_vm2, %v1335_v2 }
 0x9a4   : > { %1797 = vst.msk [vmem:[%s2541_s15 + $0x18] sm:$0xff] %vm556_vm2, %v1329_v4  ;;  %v1334_v17 = vpack.c.bf16 %v1329_v4, %v1329_v4 }
 0x9a6   : > { %1968 = vmatmul.mubr.msk.bf16.vlgmr.msra.gmra.mrb[28].mxu0 %vm556_vm2, %v1334_v17 }
 0x9a7   : > { %1985 = vmatprep.mubr.msk.bf16.mxu0 %vm2294_vm0, %v2293_v0  ;;  %1978 = vmatpush3.bf16.msra.mxu0 %v2089_v5 }
 0x9a8   : > { %1979 = vmatprep.subr.bf16.mxu0 %v2293_v0 }
 0x9ab   : > { %1980 = vmatpush3.bf16.msra.mxu0 %v2090_v6 }
 0x9ac   : > { %1981 = vmatprep.subr.bf16.mxu0 %v2293_v0 }
 0x9af   : > { %1982 = vmatpush3.bf16.msra.mxu0 %v2091_v7 }
 0x9b0   : > { %1983 = vmatprep.subr.bf16.mxu0 %v2293_v0  ;;  %v2070_v0 = vunpack.i.l.bf16 %v2069_v19 }
 0x9b2   : > { %v1452_v27 = vsel %vm556_vm2, %v2565_v62, %v2070_v0 }
 0x9b3   : > { %1984 = vmatpush3.bf16.msra.mxu0 %v2092_v8  ;;  %v1454_v31 = vsel %vm422_vm1, %v1452_v27, %v2075_v21 }
 0xa75   : > { %v1422_v9 = vpop.f32.mrb[36].mxu1 }
 0xa76   : > { %v1975_v10 = vpop.f32.mrb[37].mxu1 }
 0xa77   : > { %v1425_v20 = vpop.f32.mrb[38].mxu1 }
 0xa78   : > { %v1976_v11 = vpop.f32.mrb[39].mxu1 }
 0xa79   : > { %v1376_v12 = vpop.f32.mrb[28].mxu0 }
 0xa7a   : > { %v2077_v13 = vpack.i.bf16 %v1422_v9, %v1376_v12  ;;  %v1969_v14 = vpop.f32.mrb[29].mxu0 }
 0xa7b   : > { %v1379_v16 = vpop.f32.mrb[30].mxu0 }
 0xa7c   : > { %2078 = vrot.lane.b32.xlu0 %v2077_v13, %s2297_s18  ;;  %v1970_v18 = vpop.f32.mrb[31].mxu0 }
 0xaee   : > { %v2079_v25 = vpop.permute.xlu0 %2078 }
 0xaef   : > { %v2081_v28 = vunpack.i.h.bf16 %v2079_v25  ;;  %v2080_v29 = vunpack.i.l.bf16 %v2079_v25 }
 0xaf1   : > { %v1458_v32 = vsel %vm1456_vm3, %v1455_v30, %v2081_v28  ;;  %v1457_v33 = vsel %vm1456_vm3, %v1454_v31, %v2080_v29 }
 0xaf2   : > { %v1459_v34 = vpack.c.bf16 %v1458_v32, %v1457_v33 }
 0xaf4   : > { %1986 = vmatmul.mubr.msk.bf16.vlgmr.msra.gmra.mrb[32].mxu0 %vm1499_vm4, %v1459_v34 }
 0xbc7   : > { %v1537_v58 = vpop.f32.mrb[32].mxu0 }
 0xbc8   : > { %v1538_v36 = vadd.f32 %v1801_v35, %v1537_v58  ;;  %v1987_v37 = vpop.f32.mrb[33].mxu0 }
 0xbc9   : > { %v1540_v62 = vpop.f32.mrb[34].mxu0 }
 0xbca   : > { %v1541_v38 = vadd.f32 %v1801_v35, %v1540_v62  ;;  %v1988_v39 = vpop.f32.mrb[35].mxu0  ;;  %v1544_v40 = vsel %vm1499_vm4, %v1538_v36, 0.0 }
 0xbcb   : > { %1545 = vadd.xlane.f32.xlu1 %v1544_v40 }
 0xbcc   : > { %v1547_v41 = vsel %vm1499_vm4, %v1541_v38, 0.0 }
 0xbcd   : > { %1548 = vadd.xlane.f32.xlu0 %v1547_v41 }
 0xc58   : > { %v1546_v42 = vpop.xlane.xlu1 %1545 }
 0xc59   : > { %v1551_v44 = vmul.f32 0.015625, %v1546_v42 }
 0xc5a   : > { %v1549_v45 = vpop.xlane.xlu0 %1548 }
 0xc5b   : > { %v1553_v46 = vsub.f32 %v1538_v36, %v1551_v44  ;;  %v1552_v49 = vmul.f32 0.015625, %v1549_v45 }
 0xc5d   : > { %v1554_v50 = vsub.f32 %v1541_v38, %v1552_v49  ;;  %v1555_v51 = vmul.f32 %v1553_v46, %v1553_v46 }
 0xc5f   : > { %v1557_v52 = vsel %vm1499_vm4, %v1555_v51, 0.0  ;;  %v1556_v53 = vmul.f32 %v1554_v50, %v1554_v50 }
 0xc60   : > { %1558 = vadd.xlane.f32.xlu0 %v1557_v52 }
 0xc61   : > { %v1560_v54 = vsel %vm1499_vm4, %v1556_v53, 0.0 }
 0xc64   : > { %1561 = vadd.xlane.f32.xlu0 %v1560_v54 }
 0xc65   : > { %2198 = shalt.err (!%p2195_p13)
}
 0xc66   : > { %s2199_s15 = scalar_lea.hbm %s2694_s28, 1024  ;;  %s2203_s21 = scalar_lea.hbm %s2796_s9, 2048 }
 0xc67   : > { %p2200_p5 = scmp.ne.s32.totalorder %s2694_s28, %s2199_s15  ;;  %p2204_p9 = scmp.lt.u32.totalorder %s2694_s28, %s2796_s9 }
 0xc68   : > { %p2205_p12 = scmp.lt.u32.totalorder %s2203_s21, %s2199_s15  ;;  %p2207_p1 = scmp.lt.u32.totalorder %s2199_s15, %s2694_s28 }
 0xc69   : > { %p2201_p0 = pnand %p2200_p5, %p2815_p2 }
 0xc6a   : > { %p2206_p10 = por %p2205_p12, %p2204_p9 }
 0xc6b   : > { %p2202_p6 = pneg %p2201_p0 }
 0xc6c   : > { %p2208_p3 = por %p2207_p1, %p2206_p10 }
 0xc6e   : > { %p2209_p4 = pnand %p2208_p3, %p2202_p6 }
 0xc70   : > { %2212 = shalt.err (!%p2209_p4)
}
 0xc71   : > { %s2303_s27 = smov 128   ;;  %s2304_s16 = smov 8   ;;  %v1807_v47 = vld [vmem:[%s2793_s6] ss:$0 sm:$0xff] }
 0xc72   : > { %1998 = dma.vmem_to_hbm [thread:$0]  (%p2815_p2), %s2697_s29, 1024, %s2694_s28, %s1597_s14, %s2303_s27, %s2303_s27, %s2304_s16  }
 0xc73   : > { %s1763_s25 = sshll.u32 %s2538_s23, 4  ;;  %v1808_v61 = vld [vmem:[%s2794_s7] ss:$0 sm:$0xff]  ;;  %s1818_s28 = sshll.u32 %s2377_s13, 8 }
 0xc74   : > { %s376_s29 = scalar_lea.vmem [#allocation7], %s1763_s25  ;;  %s2738_s24 = scalar_lea.hbm %s2795_s8, %s1818_s28 }
 0xc75   : > { %s1610_s14 = sshll.u32 %s376_s29, 4  ;;  %s1592_s26 = scalar_lea.sflag [#allocation4], %s2538_s23  ;;  %s2740_s14 = int_to_ptr.vmem [resolvable:$true] %s1610_s14 }
 0xc76   : > { %s2213_s13 = scalar_lea.vmem %s2740_s14, 256  ;;  %s2305_s17 = smov [#allocation7]  }
 0xc77   : > { %p2214_p7 = scmp.ne.s32.totalorder %s2740_s14, %s2213_s13  ;;  %s2217_s22 = sshll.u32 %s2305_s17, 4  ;;  %s2218_s22 = int_to_ptr.vmem [resolvable:$false] %s2217_s22 }
 0xc78   : > { %s2219_s25 = scalar_lea.vmem %s2218_s22, 512  ;;  %p2220_p13 = scmp.lt.s32.totalorder %s2740_s14, %s2218_s22 }
 0xc79   : > { %p2215_p8 = pnand %p2214_p7, %p2815_p2  ;;  %p2221_p5 = scmp.lt.s32.totalorder %s2219_s25, %s2213_s13 }
 0xc7b   : > { %p2216_p11 = pneg %p2215_p8  ;;  %p2222_p0 = por %p2221_p5, %p2220_p13 }
 0xc7d   : > { %p2223_p6 = pnand %p2222_p0, %p2216_p11 }
 0xced   : > { %v1559_v55 = vpop.xlane.xlu0 %1558 }
 0xcee   : > { %v1563_v56 = vmul.f32 0.015625, %v1559_v55 }
 0xcf0   : > { %v1565_v57 = vadd.f32 1e-05, %v1563_v56 }
 0xcf1   : > { %v1562_v59 = vpop.xlane.xlu0 %1561 }
 0xcf2   : > { %2125 = vrsqrt.f32 %v1565_v57  ;;  %v1564_v15 = vmul.f32 0.015625, %v1562_v59 }
 0xcf4   : > { %v1566_v60 = vadd.f32 1e-05, %v1564_v15 }
 0xcf6   : > { %2127 = vrsqrt.f32 %v1566_v60 }
 0xcfc   : > { %v2126_v43 = vpop.eup %2125 }
 0xcfd   : > { %v1569_v48 = vmul.f32 %v2126_v43, %v1553_v46 }
 0xcff   : > { %v1578_v63 = vmul.f32 %v1807_v47, %v1569_v48 }
 0xd00   : > { %v2128_v1 = vpop.eup %2127 }
 0xd01   : > { %v1587_v2 = vadd.f32 %v1808_v61, %v1578_v63  ;;  %v1570_v3 = vmul.f32 %v2128_v1, %v1554_v50 }
 0xd03   : > { %v1579_v4 = vmul.f32 %v1807_v47, %v1570_v3  ;;  %1589 = vst.msk [vmem:[%s376_s29] sm:$0xff] %vm1499_vm4, %v1587_v2 }
 0xd05   : > { %v1588_v17 = vadd.f32 %v1808_v61, %v1579_v4 }
 0xd07   : > { %1590 = vst.msk [vmem:[%s376_s29 + $0x8] sm:$0xff] %vm1499_vm4, %v1588_v17 }
 0xd08   : > { %2226 = shalt.err (!%p2223_p6)
}
 0xd09   : > { %s2227_s15 = scalar_lea.hbm %s2738_s24, 256  ;;  %s2231_s29 = scalar_lea.hbm %s2795_s8, 512 }
 0xd0a   : > { %p2228_p9 = scmp.ne.s32.totalorder %s2738_s24, %s2227_s15  ;;  %p2232_p1 = scmp.lt.u32.totalorder %s2738_s24, %s2795_s8 }
 0xd0b   : > { %p2233_p3 = scmp.lt.u32.totalorder %s2231_s29, %s2227_s15  ;;  %p2235_p7 = scmp.lt.u32.totalorder %s2227_s15, %s2738_s24 }
 0xd0c   : > { %p2229_p12 = pnand %p2228_p9, %p2815_p2 }
 0xd0d   : > { %p2234_p4 = por %p2233_p3, %p2232_p1 }
 0xd0e   : > { %p2230_p10 = pneg %p2229_p12 }
 0xd0f   : > { %p2236_p8 = por %p2235_p7, %p2234_p4 }
 0xd11   : > { %p2237_p11 = pnand %p2236_p8, %p2230_p10 }
 0xd13   : > { %2240 = shalt.err (!%p2237_p11)
}
 0xd14   : > { %1997 = dma.vmem_to_hbm [thread:$0]  (%p2815_p2), %s2740_s14, 256, %s2738_s24, %s1592_s26, %s2303_s27, %s2303_s27, %s2304_s16  }
 0xd15 PF: > { %p2019_p13 = scmp.ge.s32.totalorder %s2287_s12, 2  ;;  %s1642_s13 = sand.u32 1, %s2275_s30  }
 0xd16   : > { %p2816_p5 = scmp.ne.s32.totalorder %s2807_s20, 0  ;;  %s1643_s17 = scalar_lea.sflag [#allocation4], %s1642_s13 }
 0xd18   : > { %p2009_p0 = pnand %p2019_p13, %p2816_p5 }
 0xd1a   : > { %2266 = dma.done.wait (!%p2009_p0), %s1643_s17, 256  }
 0xd1b   : > { %2268 = vsyncadd (!%p2009_p0), %s1643_s17, 4294967040  ;;  %s1652_s19 = scalar_lea.sflag [#allocation9], %s1642_s13 }
 0xd1c   : > { %2270 = dma.done.wait (!%p2009_p0), %s1652_s19, 1024  }
 0xd1d   : > { %2272 = vsyncadd (!%p2009_p0), %s1652_s19, 4294966272  ;;  %s2817_s12 = sld [smem:[#allocation15_spill]]  ;;  %s2818_s23 = sld [smem:[#allocation14_spill]] }
 0xd1e   : > { %s2819_s11 = sld [smem:[#allocation16_spill]]  ;;  %s2820_s30 = smov %s2279_s10 }
 0xd23   : > { %p25_p2 = scmp.ge.s32.totalorder %s2817_s12, 4   ;;  %s2821_s10 = smov %s2818_s23 }
 0xd25   :  { %27 = sbr.rel (!%p25_p2) target bundleno = 7 (0x7), region = 119 }
 0xd2c   :  { %1657 = vsyncpa [#allocation3], 1 }
 0xd2d   :  { %1659 = vsyncpa [#allocation3 + $0x1], 1 }
 0xd2e   :  { %1660 = vsyncpa [#allocation6], 1 }
 0xd2f   :  { %1661 = vsyncpa [#allocation4], 1 }
 0xd30   :  { %1663 = vsyncpa [#allocation4 + $0x1], 1 }
 0xd31   :  { %1664 = vsyncpa [#allocation9], 1 }
 0xd32   :  { %1666 = vsyncpa [#allocation9 + $0x1], 1 }

</bundles_post_ra>
